<compile_context>
chip_gen: v7x
topology: tpu7x:2x2x1
jax: 0.10.0
libtpu: 0.0.40
codegen_flags: <defaults>
</compile_context>

<pallas_src>
import math
from functools import partial

import jax
import jax.numpy as jnp
from jax.experimental import pallas as pl
from jax.experimental.pallas import tpu as pltpu


# Row layout of the packed (16, C) LayerNorm/bias slab (one DMA instead of ~15).
_LN_CROSS_G, _LN_CROSS_B = 0, 1
_C_BQ, _C_BK, _C_BV, _C_BO = 2, 3, 4, 5
_LN_SELF_G, _LN_SELF_B = 6, 7
_S_BQ, _S_BK, _S_BV, _S_BO = 8, 9, 10, 11
_LN_PROJ_G, _LN_PROJ_B = 12, 13
_B2 = 14
_NUM_VEC_ROWS = 16                       # pad to a multiple of 8 sublanes

# Row layout of the packed (8, C, C) attention-weight slab (one DMA instead of 8).
_C_WQ, _C_WK, _C_WV, _C_WO = 0, 1, 2, 3
_S_WQ, _S_WK, _S_WV, _S_WO = 4, 5, 6, 7


# ----------------------------------------------------------------------------
# Fused PBlock kernel (runs once per batch element; grid=(N,), parallel)
# ----------------------------------------------------------------------------

def _pblock_kernel(x_ref, attn_w_ref, w1_ref, w2_ref, vec_ref, b1_ref, o_ref,
                   *, num_heads, dec_tokens, eps, act):
    """x_ref/o_ref: (L, C) for one batch element; weights resident in VMEM."""
    L, C = x_ref.shape
    H = num_heads
    Dh = C // H
    Lq = dec_tokens
    scale = 1.0 / math.sqrt(Dh)
    mxu = attn_w_ref.dtype                         # bf16 operands, f32 accumulate

    xv = x_ref[...].astype(jnp.float32)            # (L, C)
    s0 = xv[:Lq, :]                                # decoder tokens
    d0 = xv[Lq:, :]                                # pass-through tokens
    vec = vec_ref[...]                             # (16, C) f32 LN/bias slab

    def ln(x, gi, bi):
        # PyTorch LayerNorm: biased variance, eps inside the sqrt. Pure f32 VPU.
        mean = jnp.mean(x, axis=-1, keepdims=True)
        xc = x - mean
        var = jnp.mean(xc * xc, axis=-1, keepdims=True)
        return xc * jax.lax.rsqrt(var + eps) * vec[gi:gi + 1, :] + vec[bi:bi + 1, :]

    def proj(x, wi, bi):
        # Separate q/k/v dots (no sub-128-lane splits of a fused projection).
        return (jnp.dot(x.astype(mxu), attn_w_ref[wi],
                        preferred_element_type=jnp.float32)
                + vec[bi:bi + 1, :])

    def split_heads(t):
        # (Lt, C) -> (H, Lt, Dh) by stacking lane slices along a new leading
        # dim (cheap relayout; avoids reshaping the tiled minor dims).
        return jnp.stack([t[:, h * Dh:(h + 1) * Dh] for h in range(H)],
                         axis=0).astype(mxu)

    def mha(q, k, v, wo_i, bo_i):
        # q: (Lq, C) f32, already scaled by 1/sqrt(Dh); k/v: (Lk, C) f32.
        qh = split_heads(q)                        # (H, Lq, Dh)
        kh = split_heads(k)                        # (H, Lk, Dh)
        vh = split_heads(v)                        # (H, Lk, Dh)
        # One batched contraction per step instead of 2*H tiny dots.
        sc = jax.lax.dot_general(qh, kh, (((2,), (2,)), ((0,), (0,))),
                                 preferred_element_type=jnp.float32)   # (H,Lq,Lk)
        sc = sc - jnp.max(sc, axis=-1, keepdims=True)
        p = jnp.exp(sc)
        p = p * pl.reciprocal(jnp.sum(p, axis=-1, keepdims=True))       # exact
        ctx = jax.lax.dot_general(p.astype(mxu), vh,
                                  (((2,), (1,)), ((0,), (0,))),
                                  preferred_element_type=jnp.float32)  # (H,Lq,Dh)
        ctx = jnp.concatenate([ctx[h] for h in range(H)], axis=1)       # (Lq, C)
        return (jnp.dot(ctx.astype(mxu), attn_w_ref[wo_i],
                        preferred_element_type=jnp.float32)
                + vec[bo_i:bo_i + 1, :])

    # ---- cross attention residual:  s += MHA(LN(s), d, d) ----
    xn = ln(s0, _LN_CROSS_G, _LN_CROSS_B)
    q = proj(xn, _C_WQ, _C_BQ) * scale
    k = proj(d0, _C_WK, _C_BK)
    v = proj(d0, _C_WV, _C_BV)
    s1 = s0 + mha(q, k, v, _C_WO, _C_BO)

    # ---- self attention residual:  s += MHA(LN(s), LN(s), LN(s)), mask=None ----
    xn = ln(s1, _LN_SELF_G, _LN_SELF_B)
    q = proj(xn, _S_WQ, _S_BQ) * scale
    k = proj(xn, _S_WK, _S_BK)
    v = proj(xn, _S_WV, _S_BV)
    s2 = s1 + mha(q, k, v, _S_WO, _S_BO)

    # ---- projection residual:  s += W2 act(W1 LN(s))   (Dropout = identity) ----
    xn = ln(s2, _LN_PROJ_G, _LN_PROJ_B)
    hid = (jnp.dot(xn.astype(mxu), w1_ref[...],
                   preferred_element_type=jnp.float32) + b1_ref[...])
    if act == 'relu':
        hid = jnp.maximum(hid, 0.0)
    else:  # 'gelu' -> torch.nn.GELU() (erf form)
        hid = jax.nn.gelu(hid, approximate=False)
    out = (jnp.dot(hid.astype(mxu), w2_ref[...],
                   preferred_element_type=jnp.float32) + vec[_B2:_B2 + 1, :])
    s3 = s2 + out

    # Single unmasked (L, C) store: s rows updated, d rows pass through.
    o_ref[...] = jnp.concatenate([s3, d0], axis=0).astype(o_ref.dtype)


# ----------------------------------------------------------------------------
# Wrapper: only layout plumbing (one transpose in / out) + the pallas_call
# ----------------------------------------------------------------------------

def pblock_forward(x, packed, cfg):
    L, N, C = x.shape
    dt = cfg['decoder_tokens']
    H = cfg['num_heads']
    Ld = L - dt
    R = packed['b1'].shape[1]

    # Batch-leading layout so the batch grid axis blocks the LEADING dim and
    # every block's last-two dims equal the full array dims.
    xb = jnp.transpose(x, (1, 0, 2))                     # (N, L, C)

    flops = 2 * N * ((dt + 2 * Ld) * C * C               # cross q/k/v projections
                     + 2 * dt * Ld * C                   # cross scores + context
                     + dt * C * C                        # cross out projection
                     + 4 * dt * C * C                    # self q/k/v/out projections
                     + 2 * dt * dt * C                   # self scores + context
                     + 2 * dt * C * R)                   # FFN
    transcendentals = N * H * dt * (Ld + dt)             # softmax exps
    bytes_accessed = (2 * x.size * x.dtype.itemsize
                      + packed['attn_w'].size * packed['attn_w'].dtype.itemsize
                      + packed['w1'].size * packed['w1'].dtype.itemsize
                      + packed['w2'].size * packed['w2'].dtype.itemsize
                      + packed['vec'].size * 4
                      + packed['b1'].size * 4)

    # Resident (non-pipelined) whole-array VMEM operands: no double-buffering.
    resident = pl.BlockSpec(memory_space=pltpu.MemorySpace.VMEM)

    ob = pl.pallas_call(
        partial(_pblock_kernel, num_heads=H, dec_tokens=dt, eps=1e-5,
                act=cfg['nonlinearity']),
        out_shape=jax.ShapeDtypeStruct((N, L, C), x.dtype),
        grid=(N,),
        in_specs=[
            pl.BlockSpec((None, L, C), lambda n: (n, 0, 0)),   # per-batch activations
            resident,                                          # attn_w (8, C, C) bf16
            resident,                                          # w1 (C, R) bf16
            resident,                                          # w2 (R, C) bf16
            resident,                                          # vec (16, C) f32
            resident,                                          # b1 (1, R) f32
        ],
        out_specs=pl.BlockSpec((None, L, C), lambda n: (n, 0, 0)),
        compiler_params=pltpu.CompilerParams(
            dimension_semantics=("parallel",)),
        cost_estimate=pl.CostEstimate(flops=flops,
                                      transcendentals=transcendentals,
                                      bytes_accessed=bytes_accessed),
    )(xb, packed['attn_w'], packed['w1'], packed['w2'],
      packed['vec'], packed['b1'])

    return jnp.transpose(ob, (1, 0, 2))                  # back to (L, N, C)


# ----------------------------------------------------------------------------
# Parameters: "natural" PyTorch-like params + one-time packing into VMEM slabs
# (weights stored as (Cin, Cout) == PyTorch weight.T)
# ----------------------------------------------------------------------------

def init_params(key, cfg):
    C = cfg['channels']
    R = cfg['residual_channels']

    def w(k, shape):
        return 0.02 * jax.random.normal(k, shape, jnp.float32)

    def z(n):
        return jnp.zeros((n,), jnp.float32)

    keys = jax.random.split(key, 10)
    return dict(
        ln_cross_g=jnp.ones((C,), jnp.float32), ln_cross_b=z(C),
        cross_attn=dict(wq=w(keys[0], (C, C)), wk=w(keys[1], (C, C)),
                        wv=w(keys[2], (C, C)), wo=w(keys[3], (C, C)),
                        bq=z(C), bk=z(C), bv=z(C), bo=z(C)),
        ln_self_g=jnp.ones((C,), jnp.float32), ln_self_b=z(C),
        self_attn=dict(wq=w(keys[4], (C, C)), wk=w(keys[5], (C, C)),
                       wv=w(keys[6], (C, C)), wo=w(keys[7], (C, C)),
                       bq=z(C), bk=z(C), bv=z(C), bo=z(C)),
        ln_proj_g=jnp.ones((C,), jnp.float32), ln_proj_b=z(C),
        w1=w(keys[8], (C, R)), b1=z(R),
        w2=w(keys[9], (R, C)), b2=z(C),
    )


def pack_params(params, cfg, mxu_dtype=jnp.bfloat16):
    """One-time packing: 2 weight slabs (bf16 for the MXU) + 2 f32 bias slabs."""
    C = cfg['channels']
    R = cfg['residual_channels']
    ca, sa = params['cross_attn'], params['self_attn']

    attn_w = jnp.stack([ca['wq'], ca['wk'], ca['wv'], ca['wo'],
                        sa['wq'], sa['wk'], sa['wv'], sa['wo']],
                       axis=0).astype(mxu_dtype)                      # (8, C, C)

    rows = [
        params['ln_cross_g'], params['ln_cross_b'],
        ca['bq'], ca['bk'], ca['bv'], ca['bo'],
        params['ln_self_g'], params['ln_self_b'],
        sa['bq'], sa['bk'], sa['bv'], sa['bo'],
        params['ln_proj_g'], params['ln_proj_b'],
        params['b2'],
    ]
    rows += [jnp.zeros((C,), jnp.float32)] * (_NUM_VEC_ROWS - len(rows))
    vec = jnp.stack(rows, axis=0).astype(jnp.float32)                 # (16, C)

    return dict(attn_w=attn_w,
                w1=params['w1'].astype(mxu_dtype),
                w2=params['w2'].astype(mxu_dtype),
                vec=vec,
                b1=params['b1'].reshape(1, R).astype(jnp.float32))


# ----------------------------------------------------------------------------
# Pure-JAX f32 reference (mirrors PyTorch PBlock eval semantics) for validation
# ----------------------------------------------------------------------------

def pblock_reference(x, params, cfg):
    dt = cfg['decoder_tokens']
    H = cfg['num_heads']
    L, N, C = x.shape
    Dh = C // H
    s, d = x[:dt], x[dt:]

    def ln(t, g, b):
        m = jnp.mean(t, -1, keepdims=True)
        v = jnp.mean((t - m) ** 2, -1, keepdims=True)
        return (t - m) * jax.lax.rsqrt(v + 1e-5) * g + b

    def mha(q_in, kv_in, p):
        q = q_in @ p['wq'] + p['bq']
        k = kv_in @ p['wk'] + p['bk']
        v = kv_in @ p['wv'] + p['bv']
        Lq_, Lk_ = q.shape[0], k.shape[0]

        def sh(t, Lt):
            return t.reshape(Lt, N, H, Dh).transpose(1, 2, 0, 3)

        qh, kh, vh = sh(q, Lq_), sh(k, Lk_), sh(v, Lk_)
        sc = jnp.einsum('nhqd,nhkd->nhqk', qh * (Dh ** -0.5), kh)
        a = jax.nn.softmax(sc, axis=-1)
        ctx = jnp.einsum('nhqk,nhkd->nhqd', a, vh)
        ctx = ctx.transpose(2, 0, 1, 3).reshape(Lq_, N, C)
        return ctx @ p['wo'] + p['bo']

    s = s + mha(ln(s, params['ln_cross_g'], params['ln_cross_b']), d,
                params['cross_attn'])
    sn = ln(s, params['ln_self_g'], params['ln_self_b'])
    s = s + mha(sn, sn, params['self_attn'])
    sn = ln(s, params['ln_proj_g'], params['ln_proj_b'])
    h = sn @ params['w1'] + params['b1']
    if cfg['nonlinearity'] == 'relu':
        h = jnp.maximum(h, 0.0)
    else:
        h = jax.nn.gelu(h, approximate=False)
    s = s + (h @ params['w2'] + params['b2'])
    return jnp.concatenate([s, d], axis=0)


if __name__ == "__main__":
    cfg = dict(
        decoder_tokens=4,
        channels=32,
        num_heads=4,
        residual_channels=64,
        nonlinearity='relu',          # config.nonlinearity -> ReLU()
        attention_dropout=0.0,        # eval mode: dropout is identity
        residual_dropout=0.0,
    )
    L, N, C = 8, 2, cfg['channels']   # seq=8 (4 decoder + 4 other), batch=2

    key = jax.random.PRNGKey(0)
    k_param, k_x = jax.random.split(key)
    params = init_params(k_param, cfg)
    packed = pack_params(params, cfg)          # bf16 MXU operands, f32 biases
    x = jax.random.normal(k_x, (L, N, C), jnp.float32)

    fwd = jax.jit(partial(pblock_forward, cfg=cfg))
    y = fwd(x, packed)
    jax.block_until_ready(y)

    assert y.shape == (L, N, C) and y.dtype == jnp.float32
    # d tokens must pass through unchanged (written through the kernel).
    assert bool(jnp.allclose(y[cfg['decoder_tokens']:], x[cfg['decoder_tokens']:]))
    # Match the f32 reference (loose tolerance: bf16 MXU operands).
    y_ref = pblock_reference(x, params, cfg)
    assert bool(jnp.allclose(y, y_ref, rtol=3e-2, atol=3e-2))
    print("KERNEL_OK")
</pallas_src>

<mosaic_0001>
module attributes {stable_mosaic.version = 11 : i64} {
  func.func @_pblock_kernel(%arg0: i32, %arg1: memref<1x8x32xf32, #tpu.memory_space<vmem>>, %arg2: memref<8x32x32xbf16, #tpu.memory_space<vmem>>, %arg3: memref<32x64xbf16, #tpu.memory_space<vmem>>, %arg4: memref<64x32xbf16, #tpu.memory_space<vmem>>, %arg5: memref<16x32xf32, #tpu.memory_space<vmem>>, %arg6: memref<1x64xf32, #tpu.memory_space<vmem>>, %arg7: memref<1x8x32xf32, #tpu.memory_space<vmem>>) attributes {dimension_semantics = [#tpu.dimension_semantics<parallel>], iteration_bounds = array<i64: 2>, scalar_prefetch = 0 : i64, scratch_operands = 0 : i64, tpu.core_type = #tpu.core_type<tc>, window_params = [{transform_indices = @transform_0, window_bounds = array<i64: 1, 8, 32>}, {pipeline_mode = #tpu.pipeline_mode<synchronous>, transform_indices = @transform_1, window_bounds = array<i64: 8, 32, 32>}, {pipeline_mode = #tpu.pipeline_mode<synchronous>, transform_indices = @transform_2, window_bounds = array<i64: 32, 64>}, {pipeline_mode = #tpu.pipeline_mode<synchronous>, transform_indices = @transform_3, window_bounds = array<i64: 64, 32>}, {pipeline_mode = #tpu.pipeline_mode<synchronous>, transform_indices = @transform_4, window_bounds = array<i64: 16, 32>}, {pipeline_mode = #tpu.pipeline_mode<synchronous>, transform_indices = @transform_5, window_bounds = array<i64: 1, 64>}, {transform_indices = @transform_6, window_bounds = array<i64: 1, 8, 32>}]} {
    %c0 = arith.constant 0 : index
    %c0_0 = arith.constant 0 : index
    %c0_1 = arith.constant 0 : index
    %0 = vector.load %arg1[%c0, %c0_0, %c0_1] : memref<1x8x32xf32, #tpu.memory_space<vmem>>, vector<1x8x32xf32>
    %1 = vector.shape_cast %0 : vector<1x8x32xf32> to vector<8x32xf32>
    %2 = vector.extract_strided_slice %1 {offsets = [0, 0], sizes = [4, 32], strides = [1, 1]} : vector<8x32xf32> to vector<4x32xf32>
    %3 = vector.extract_strided_slice %1 {offsets = [4, 0], sizes = [4, 32], strides = [1, 1]} : vector<8x32xf32> to vector<4x32xf32>
    %c0_2 = arith.constant 0 : index
    %c0_3 = arith.constant 0 : index
    %4 = vector.load %arg5[%c0_2, %c0_3] : memref<16x32xf32, #tpu.memory_space<vmem>>, vector<16x32xf32>
    %cst = arith.constant dense<0.000000e+00> : vector<4xf32>
    %5 = vector.multi_reduction <add>, %2, %cst [1] : vector<4x32xf32> to vector<4xf32>
    %6 = vector.shape_cast %5 : vector<4xf32> to vector<4x1xf32>
    %cst_4 = arith.constant 3.200000e+01 : f32
    %7 = vector.broadcast %cst_4 : f32 to vector<4x1xf32>
    %8 = arith.divf %6, %7 : vector<4x1xf32>
    %9 = vector.broadcast %8 : vector<4x1xf32> to vector<4x32xf32>
    %10 = arith.subf %2, %9 : vector<4x32xf32>
    %11 = arith.mulf %10, %10 : vector<4x32xf32>
    %cst_5 = arith.constant dense<0.000000e+00> : vector<4xf32>
    %12 = vector.multi_reduction <add>, %11, %cst_5 [1] : vector<4x32xf32> to vector<4xf32>
    %13 = vector.shape_cast %12 : vector<4xf32> to vector<4x1xf32>
    %cst_6 = arith.constant 3.200000e+01 : f32
    %14 = vector.broadcast %cst_6 : f32 to vector<4x1xf32>
    %15 = arith.divf %13, %14 : vector<4x1xf32>
    %cst_7 = arith.constant 9.99999974E-6 : f32
    %16 = vector.broadcast %cst_7 : f32 to vector<4x1xf32>
    %17 = arith.addf %15, %16 : vector<4x1xf32>
    %18 = math.rsqrt %17 : vector<4x1xf32>
    %19 = vector.broadcast %18 : vector<4x1xf32> to vector<4x32xf32>
    %20 = arith.mulf %10, %19 : vector<4x32xf32>
    %21 = vector.extract_strided_slice %4 {offsets = [0, 0], sizes = [1, 32], strides = [1, 1]} : vector<16x32xf32> to vector<1x32xf32>
    %22 = vector.broadcast %21 : vector<1x32xf32> to vector<4x32xf32>
    %23 = arith.mulf %20, %22 : vector<4x32xf32>
    %24 = vector.extract_strided_slice %4 {offsets = [1, 0], sizes = [1, 32], strides = [1, 1]} : vector<16x32xf32> to vector<1x32xf32>
    %25 = vector.broadcast %24 : vector<1x32xf32> to vector<4x32xf32>
    %26 = arith.addf %23, %25 : vector<4x32xf32>
    %27 = arith.truncf %26 : vector<4x32xf32> to vector<4x32xbf16>
    %c0_8 = arith.constant 0 : index
    %c0_9 = arith.constant 0 : index
    %c0_10 = arith.constant 0 : index
    %28 = vector.load %arg2[%c0_8, %c0_9, %c0_10] : memref<8x32x32xbf16, #tpu.memory_space<vmem>>, vector<1x32x32xbf16>
    %29 = vector.shape_cast %28 : vector<1x32x32xbf16> to vector<32x32xbf16>
    %cst_11 = arith.constant dense<0.000000e+00> : vector<4x32xf32>
    %30 = tpu.matmul %27, %29, %cst_11 {dimension_numbers = #tpu.dot_dimension_numbers<[1], [0], [0], [1], [0, 0, 1, 1], [], []>} : vector<4x32xbf16>, vector<32x32xbf16>, vector<4x32xf32> -> vector<4x32xf32>
    %31 = vector.extract_strided_slice %4 {offsets = [2, 0], sizes = [1, 32], strides = [1, 1]} : vector<16x32xf32> to vector<1x32xf32>
    %32 = vector.broadcast %31 : vector<1x32xf32> to vector<4x32xf32>
    %33 = arith.addf %30, %32 : vector<4x32xf32>
    %cst_12 = arith.constant 0.353553385 : f32
    %34 = vector.broadcast %cst_12 : f32 to vector<4x32xf32>
    %35 = arith.mulf %33, %34 : vector<4x32xf32>
    %36 = arith.truncf %3 : vector<4x32xf32> to vector<4x32xbf16>
    %c1 = arith.constant 1 : index
    %c0_13 = arith.constant 0 : index
    %c0_14 = arith.constant 0 : index
    %37 = vector.load %arg2[%c1, %c0_13, %c0_14] : memref<8x32x32xbf16, #tpu.memory_space<vmem>>, vector<1x32x32xbf16>
    %38 = vector.shape_cast %37 : vector<1x32x32xbf16> to vector<32x32xbf16>
    %cst_15 = arith.constant dense<0.000000e+00> : vector<4x32xf32>
    %39 = tpu.matmul %36, %38, %cst_15 {dimension_numbers = #tpu.dot_dimension_numbers<[1], [0], [0], [1], [0, 0, 1, 1], [], []>} : vector<4x32xbf16>, vector<32x32xbf16>, vector<4x32xf32> -> vector<4x32xf32>
    %40 = vector.extract_strided_slice %4 {offsets = [3, 0], sizes = [1, 32], strides = [1, 1]} : vector<16x32xf32> to vector<1x32xf32>
    %41 = vector.broadcast %40 : vector<1x32xf32> to vector<4x32xf32>
    %42 = arith.addf %39, %41 : vector<4x32xf32>
    %43 = arith.truncf %3 : vector<4x32xf32> to vector<4x32xbf16>
    %c2 = arith.constant 2 : index
    %c0_16 = arith.constant 0 : index
    %c0_17 = arith.constant 0 : index
    %44 = vector.load %arg2[%c2, %c0_16, %c0_17] : memref<8x32x32xbf16, #tpu.memory_space<vmem>>, vector<1x32x32xbf16>
    %45 = vector.shape_cast %44 : vector<1x32x32xbf16> to vector<32x32xbf16>
    %cst_18 = arith.constant dense<0.000000e+00> : vector<4x32xf32>
    %46 = tpu.matmul %43, %45, %cst_18 {dimension_numbers = #tpu.dot_dimension_numbers<[1], [0], [0], [1], [0, 0, 1, 1], [], []>} : vector<4x32xbf16>, vector<32x32xbf16>, vector<4x32xf32> -> vector<4x32xf32>
    %47 = vector.extract_strided_slice %4 {offsets = [4, 0], sizes = [1, 32], strides = [1, 1]} : vector<16x32xf32> to vector<1x32xf32>
    %48 = vector.broadcast %47 : vector<1x32xf32> to vector<4x32xf32>
    %49 = arith.addf %46, %48 : vector<4x32xf32>
    %50 = vector.extract_strided_slice %35 {offsets = [0, 0], sizes = [4, 8], strides = [1, 1]} : vector<4x32xf32> to vector<4x8xf32>
    %51 = vector.extract_strided_slice %35 {offsets = [0, 8], sizes = [4, 8], strides = [1, 1]} : vector<4x32xf32> to vector<4x8xf32>
    %52 = vector.extract_strided_slice %35 {offsets = [0, 16], sizes = [4, 8], strides = [1, 1]} : vector<4x32xf32> to vector<4x8xf32>
    %53 = vector.extract_strided_slice %35 {offsets = [0, 24], sizes = [4, 8], strides = [1, 1]} : vector<4x32xf32> to vector<4x8xf32>
    %54 = vector.shape_cast %50 : vector<4x8xf32> to vector<1x4x8xf32>
    %55 = vector.shape_cast %51 : vector<4x8xf32> to vector<1x4x8xf32>
    %56 = vector.shape_cast %52 : vector<4x8xf32> to vector<1x4x8xf32>
    %57 = vector.shape_cast %53 : vector<4x8xf32> to vector<1x4x8xf32>
    %58 = tpu.concatenate %54, %55, %56, %57 in 0 : vector<1x4x8xf32>, vector<1x4x8xf32>, vector<1x4x8xf32>, vector<1x4x8xf32> -> vector<4x4x8xf32>
    %59 = arith.truncf %58 : vector<4x4x8xf32> to vector<4x4x8xbf16>
    %60 = vector.extract_strided_slice %42 {offsets = [0, 0], sizes = [4, 8], strides = [1, 1]} : vector<4x32xf32> to vector<4x8xf32>
    %61 = vector.extract_strided_slice %42 {offsets = [0, 8], sizes = [4, 8], strides = [1, 1]} : vector<4x32xf32> to vector<4x8xf32>
    %62 = vector.extract_strided_slice %42 {offsets = [0, 16], sizes = [4, 8], strides = [1, 1]} : vector<4x32xf32> to vector<4x8xf32>
    %63 = vector.extract_strided_slice %42 {offsets = [0, 24], sizes = [4, 8], strides = [1, 1]} : vector<4x32xf32> to vector<4x8xf32>
    %64 = vector.shape_cast %60 : vector<4x8xf32> to vector<1x4x8xf32>
    %65 = vector.shape_cast %61 : vector<4x8xf32> to vector<1x4x8xf32>
    %66 = vector.shape_cast %62 : vector<4x8xf32> to vector<1x4x8xf32>
    %67 = vector.shape_cast %63 : vector<4x8xf32> to vector<1x4x8xf32>
    %68 = tpu.concatenate %64, %65, %66, %67 in 0 : vector<1x4x8xf32>, vector<1x4x8xf32>, vector<1x4x8xf32>, vector<1x4x8xf32> -> vector<4x4x8xf32>
    %69 = arith.truncf %68 : vector<4x4x8xf32> to vector<4x4x8xbf16>
    %70 = vector.extract_strided_slice %49 {offsets = [0, 0], sizes = [4, 8], strides = [1, 1]} : vector<4x32xf32> to vector<4x8xf32>
    %71 = vector.extract_strided_slice %49 {offsets = [0, 8], sizes = [4, 8], strides = [1, 1]} : vector<4x32xf32> to vector<4x8xf32>
    %72 = vector.extract_strided_slice %49 {offsets = [0, 16], sizes = [4, 8], strides = [1, 1]} : vector<4x32xf32> to vector<4x8xf32>
    %73 = vector.extract_strided_slice %49 {offsets = [0, 24], sizes = [4, 8], strides = [1, 1]} : vector<4x32xf32> to vector<4x8xf32>
    %74 = vector.shape_cast %70 : vector<4x8xf32> to vector<1x4x8xf32>
    %75 = vector.shape_cast %71 : vector<4x8xf32> to vector<1x4x8xf32>
    %76 = vector.shape_cast %72 : vector<4x8xf32> to vector<1x4x8xf32>
    %77 = vector.shape_cast %73 : vector<4x8xf32> to vector<1x4x8xf32>
    %78 = tpu.concatenate %74, %75, %76, %77 in 0 : vector<1x4x8xf32>, vector<1x4x8xf32>, vector<1x4x8xf32>, vector<1x4x8xf32> -> vector<4x4x8xf32>
    %79 = arith.truncf %78 : vector<4x4x8xf32> to vector<4x4x8xbf16>
    %cst_19 = arith.constant dense<0.000000e+00> : vector<4x4x4xf32>
    %80 = tpu.matmul %59, %69, %cst_19 {dimension_numbers = #tpu.dot_dimension_numbers<[2], [2], [1], [1], [0, 0, 0, 1, 1, 1], [0], [0]>} : vector<4x4x8xbf16>, vector<4x4x8xbf16>, vector<4x4x4xf32> -> vector<4x4x4xf32>
    %cst_20 = arith.constant dense<0xFF800000> : vector<4x4xf32>
    %81 = vector.multi_reduction <maximumf>, %80, %cst_20 [2] : vector<4x4x4xf32> to vector<4x4xf32>
    %82 = vector.shape_cast %81 : vector<4x4xf32> to vector<4x4x1xf32>
    %83 = vector.broadcast %82 : vector<4x4x1xf32> to vector<4x4x4xf32>
    %84 = arith.subf %80, %83 : vector<4x4x4xf32>
    %85 = math.exp %84 : vector<4x4x4xf32>
    %cst_21 = arith.constant dense<0.000000e+00> : vector<4x4xf32>
    %86 = vector.multi_reduction <add>, %85, %cst_21 [2] : vector<4x4x4xf32> to vector<4x4xf32>
    %87 = vector.shape_cast %86 : vector<4x4xf32> to vector<4x4x1xf32>
    %88 = tpu.reciprocal %87 : vector<4x4x1xf32> -> vector<4x4x1xf32>
    %89 = vector.broadcast %88 : vector<4x4x1xf32> to vector<4x4x4xf32>
    %90 = arith.mulf %85, %89 : vector<4x4x4xf32>
    %91 = arith.truncf %90 : vector<4x4x4xf32> to vector<4x4x4xbf16>
    %cst_22 = arith.constant dense<0.000000e+00> : vector<4x4x8xf32>
    %92 = tpu.matmul %91, %79, %cst_22 {dimension_numbers = #tpu.dot_dimension_numbers<[2], [1], [1], [2], [0, 0, 0, 1, 1, 2], [0], [0]>} : vector<4x4x4xbf16>, vector<4x4x8xbf16>, vector<4x4x8xf32> -> vector<4x4x8xf32>
    %93 = vector.extract_strided_slice %92 {offsets = [0, 0, 0], sizes = [1, 4, 8], strides = [1, 1, 1]} : vector<4x4x8xf32> to vector<1x4x8xf32>
    %94 = vector.shape_cast %93 : vector<1x4x8xf32> to vector<4x8xf32>
    %95 = vector.extract_strided_slice %92 {offsets = [1, 0, 0], sizes = [1, 4, 8], strides = [1, 1, 1]} : vector<4x4x8xf32> to vector<1x4x8xf32>
    %96 = vector.shape_cast %95 : vector<1x4x8xf32> to vector<4x8xf32>
    %97 = vector.extract_strided_slice %92 {offsets = [2, 0, 0], sizes = [1, 4, 8], strides = [1, 1, 1]} : vector<4x4x8xf32> to vector<1x4x8xf32>
    %98 = vector.shape_cast %97 : vector<1x4x8xf32> to vector<4x8xf32>
    %99 = vector.extract_strided_slice %92 {offsets = [3, 0, 0], sizes = [1, 4, 8], strides = [1, 1, 1]} : vector<4x4x8xf32> to vector<1x4x8xf32>
    %100 = vector.shape_cast %99 : vector<1x4x8xf32> to vector<4x8xf32>
    %101 = tpu.concatenate %94, %96, %98, %100 in 1 : vector<4x8xf32>, vector<4x8xf32>, vector<4x8xf32>, vector<4x8xf32> -> vector<4x32xf32>
    %102 = arith.truncf %101 : vector<4x32xf32> to vector<4x32xbf16>
    %c3 = arith.constant 3 : index
    %c0_23 = arith.constant 0 : index
    %c0_24 = arith.constant 0 : index
    %103 = vector.load %arg2[%c3, %c0_23, %c0_24] : memref<8x32x32xbf16, #tpu.memory_space<vmem>>, vector<1x32x32xbf16>
    %104 = vector.shape_cast %103 : vector<1x32x32xbf16> to vector<32x32xbf16>
    %cst_25 = arith.constant dense<0.000000e+00> : vector<4x32xf32>
    %105 = tpu.matmul %102, %104, %cst_25 {dimension_numbers = #tpu.dot_dimension_numbers<[1], [0], [0], [1], [0, 0, 1, 1], [], []>} : vector<4x32xbf16>, vector<32x32xbf16>, vector<4x32xf32> -> vector<4x32xf32>
    %106 = vector.extract_strided_slice %4 {offsets = [5, 0], sizes = [1, 32], strides = [1, 1]} : vector<16x32xf32> to vector<1x32xf32>
    %107 = vector.broadcast %106 : vector<1x32xf32> to vector<4x32xf32>
    %108 = arith.addf %105, %107 : vector<4x32xf32>
    %109 = arith.addf %2, %108 : vector<4x32xf32>
    %cst_26 = arith.constant dense<0.000000e+00> : vector<4xf32>
    %110 = vector.multi_reduction <add>, %109, %cst_26 [1] : vector<4x32xf32> to vector<4xf32>
    %111 = vector.shape_cast %110 : vector<4xf32> to vector<4x1xf32>
    %cst_27 = arith.constant 3.200000e+01 : f32
    %112 = vector.broadcast %cst_27 : f32 to vector<4x1xf32>
    %113 = arith.divf %111, %112 : vector<4x1xf32>
    %114 = vector.broadcast %113 : vector<4x1xf32> to vector<4x32xf32>
    %115 = arith.subf %109, %114 : vector<4x32xf32>
    %116 = arith.mulf %115, %115 : vector<4x32xf32>
    %cst_28 = arith.constant dense<0.000000e+00> : vector<4xf32>
    %117 = vector.multi_reduction <add>, %116, %cst_28 [1] : vector<4x32xf32> to vector<4xf32>
    %118 = vector.shape_cast %117 : vector<4xf32> to vector<4x1xf32>
    %cst_29 = arith.constant 3.200000e+01 : f32
    %119 = vector.broadcast %cst_29 : f32 to vector<4x1xf32>
    %120 = arith.divf %118, %119 : vector<4x1xf32>
    %cst_30 = arith.constant 9.99999974E-6 : f32
    %121 = vector.broadcast %cst_30 : f32 to vector<4x1xf32>
    %122 = arith.addf %120, %121 : vector<4x1xf32>
    %123 = math.rsqrt %122 : vector<4x1xf32>
    %124 = vector.broadcast %123 : vector<4x1xf32> to vector<4x32xf32>
    %125 = arith.mulf %115, %124 : vector<4x32xf32>
    %126 = vector.extract_strided_slice %4 {offsets = [6, 0], sizes = [1, 32], strides = [1, 1]} : vector<16x32xf32> to vector<1x32xf32>
    %127 = vector.broadcast %126 : vector<1x32xf32> to vector<4x32xf32>
    %128 = arith.mulf %125, %127 : vector<4x32xf32>
    %129 = vector.extract_strided_slice %4 {offsets = [7, 0], sizes = [1, 32], strides = [1, 1]} : vector<16x32xf32> to vector<1x32xf32>
    %130 = vector.broadcast %129 : vector<1x32xf32> to vector<4x32xf32>
    %131 = arith.addf %128, %130 : vector<4x32xf32>
    %132 = arith.truncf %131 : vector<4x32xf32> to vector<4x32xbf16>
    %c4 = arith.constant 4 : index
    %c0_31 = arith.constant 0 : index
    %c0_32 = arith.constant 0 : index
    %133 = vector.load %arg2[%c4, %c0_31, %c0_32] : memref<8x32x32xbf16, #tpu.memory_space<vmem>>, vector<1x32x32xbf16>
    %134 = vector.shape_cast %133 : vector<1x32x32xbf16> to vector<32x32xbf16>
    %cst_33 = arith.constant dense<0.000000e+00> : vector<4x32xf32>
    %135 = tpu.matmul %132, %134, %cst_33 {dimension_numbers = #tpu.dot_dimension_numbers<[1], [0], [0], [1], [0, 0, 1, 1], [], []>} : vector<4x32xbf16>, vector<32x32xbf16>, vector<4x32xf32> -> vector<4x32xf32>
    %136 = vector.extract_strided_slice %4 {offsets = [8, 0], sizes = [1, 32], strides = [1, 1]} : vector<16x32xf32> to vector<1x32xf32>
    %137 = vector.broadcast %136 : vector<1x32xf32> to vector<4x32xf32>
    %138 = arith.addf %135, %137 : vector<4x32xf32>
    %cst_34 = arith.constant 0.353553385 : f32
    %139 = vector.broadcast %cst_34 : f32 to vector<4x32xf32>
    %140 = arith.mulf %138, %139 : vector<4x32xf32>
    %141 = arith.truncf %131 : vector<4x32xf32> to vector<4x32xbf16>
    %c5 = arith.constant 5 : index
    %c0_35 = arith.constant 0 : index
    %c0_36 = arith.constant 0 : index
    %142 = vector.load %arg2[%c5, %c0_35, %c0_36] : memref<8x32x32xbf16, #tpu.memory_space<vmem>>, vector<1x32x32xbf16>
    %143 = vector.shape_cast %142 : vector<1x32x32xbf16> to vector<32x32xbf16>
    %cst_37 = arith.constant dense<0.000000e+00> : vector<4x32xf32>
    %144 = tpu.matmul %141, %143, %cst_37 {dimension_numbers = #tpu.dot_dimension_numbers<[1], [0], [0], [1], [0, 0, 1, 1], [], []>} : vector<4x32xbf16>, vector<32x32xbf16>, vector<4x32xf32> -> vector<4x32xf32>
    %145 = vector.extract_strided_slice %4 {offsets = [9, 0], sizes = [1, 32], strides = [1, 1]} : vector<16x32xf32> to vector<1x32xf32>
    %146 = vector.broadcast %145 : vector<1x32xf32> to vector<4x32xf32>
    %147 = arith.addf %144, %146 : vector<4x32xf32>
    %148 = arith.truncf %131 : vector<4x32xf32> to vector<4x32xbf16>
    %c6 = arith.constant 6 : index
    %c0_38 = arith.constant 0 : index
    %c0_39 = arith.constant 0 : index
    %149 = vector.load %arg2[%c6, %c0_38, %c0_39] : memref<8x32x32xbf16, #tpu.memory_space<vmem>>, vector<1x32x32xbf16>
    %150 = vector.shape_cast %149 : vector<1x32x32xbf16> to vector<32x32xbf16>
    %cst_40 = arith.constant dense<0.000000e+00> : vector<4x32xf32>
    %151 = tpu.matmul %148, %150, %cst_40 {dimension_numbers = #tpu.dot_dimension_numbers<[1], [0], [0], [1], [0, 0, 1, 1], [], []>} : vector<4x32xbf16>, vector<32x32xbf16>, vector<4x32xf32> -> vector<4x32xf32>
    %152 = vector.extract_strided_slice %4 {offsets = [10, 0], sizes = [1, 32], strides = [1, 1]} : vector<16x32xf32> to vector<1x32xf32>
    %153 = vector.broadcast %152 : vector<1x32xf32> to vector<4x32xf32>
    %154 = arith.addf %151, %153 : vector<4x32xf32>
    %155 = vector.extract_strided_slice %140 {offsets = [0, 0], sizes = [4, 8], strides = [1, 1]} : vector<4x32xf32> to vector<4x8xf32>
    %156 = vector.extract_strided_slice %140 {offsets = [0, 8], sizes = [4, 8], strides = [1, 1]} : vector<4x32xf32> to vector<4x8xf32>
    %157 = vector.extract_strided_slice %140 {offsets = [0, 16], sizes = [4, 8], strides = [1, 1]} : vector<4x32xf32> to vector<4x8xf32>
    %158 = vector.extract_strided_slice %140 {offsets = [0, 24], sizes = [4, 8], strides = [1, 1]} : vector<4x32xf32> to vector<4x8xf32>
    %159 = vector.shape_cast %155 : vector<4x8xf32> to vector<1x4x8xf32>
    %160 = vector.shape_cast %156 : vector<4x8xf32> to vector<1x4x8xf32>
    %161 = vector.shape_cast %157 : vector<4x8xf32> to vector<1x4x8xf32>
    %162 = vector.shape_cast %158 : vector<4x8xf32> to vector<1x4x8xf32>
    %163 = tpu.concatenate %159, %160, %161, %162 in 0 : vector<1x4x8xf32>, vector<1x4x8xf32>, vector<1x4x8xf32>, vector<1x4x8xf32> -> vector<4x4x8xf32>
    %164 = arith.truncf %163 : vector<4x4x8xf32> to vector<4x4x8xbf16>
    %165 = vector.extract_strided_slice %147 {offsets = [0, 0], sizes = [4, 8], strides = [1, 1]} : vector<4x32xf32> to vector<4x8xf32>
    %166 = vector.extract_strided_slice %147 {offsets = [0, 8], sizes = [4, 8], strides = [1, 1]} : vector<4x32xf32> to vector<4x8xf32>
    %167 = vector.extract_strided_slice %147 {offsets = [0, 16], sizes = [4, 8], strides = [1, 1]} : vector<4x32xf32> to vector<4x8xf32>
    %168 = vector.extract_strided_slice %147 {offsets = [0, 24], sizes = [4, 8], strides = [1, 1]} : vector<4x32xf32> to vector<4x8xf32>
    %169 = vector.shape_cast %165 : vector<4x8xf32> to vector<1x4x8xf32>
    %170 = vector.shape_cast %166 : vector<4x8xf32> to vector<1x4x8xf32>
    %171 = vector.shape_cast %167 : vector<4x8xf32> to vector<1x4x8xf32>
    %172 = vector.shape_cast %168 : vector<4x8xf32> to vector<1x4x8xf32>
    %173 = tpu.concatenate %169, %170, %171, %172 in 0 : vector<1x4x8xf32>, vector<1x4x8xf32>, vector<1x4x8xf32>, vector<1x4x8xf32> -> vector<4x4x8xf32>
    %174 = arith.truncf %173 : vector<4x4x8xf32> to vector<4x4x8xbf16>
    %175 = vector.extract_strided_slice %154 {offsets = [0, 0], sizes = [4, 8], strides = [1, 1]} : vector<4x32xf32> to vector<4x8xf32>
    %176 = vector.extract_strided_slice %154 {offsets = [0, 8], sizes = [4, 8], strides = [1, 1]} : vector<4x32xf32> to vector<4x8xf32>
    %177 = vector.extract_strided_slice %154 {offsets = [0, 16], sizes = [4, 8], strides = [1, 1]} : vector<4x32xf32> to vector<4x8xf32>
    %178 = vector.extract_strided_slice %154 {offsets = [0, 24], sizes = [4, 8], strides = [1, 1]} : vector<4x32xf32> to vector<4x8xf32>
    %179 = vector.shape_cast %175 : vector<4x8xf32> to vector<1x4x8xf32>
    %180 = vector.shape_cast %176 : vector<4x8xf32> to vector<1x4x8xf32>
    %181 = vector.shape_cast %177 : vector<4x8xf32> to vector<1x4x8xf32>
    %182 = vector.shape_cast %178 : vector<4x8xf32> to vector<1x4x8xf32>
    %183 = tpu.concatenate %179, %180, %181, %182 in 0 : vector<1x4x8xf32>, vector<1x4x8xf32>, vector<1x4x8xf32>, vector<1x4x8xf32> -> vector<4x4x8xf32>
    %184 = arith.truncf %183 : vector<4x4x8xf32> to vector<4x4x8xbf16>
    %cst_41 = arith.constant dense<0.000000e+00> : vector<4x4x4xf32>
    %185 = tpu.matmul %164, %174, %cst_41 {dimension_numbers = #tpu.dot_dimension_numbers<[2], [2], [1], [1], [0, 0, 0, 1, 1, 1], [0], [0]>} : vector<4x4x8xbf16>, vector<4x4x8xbf16>, vector<4x4x4xf32> -> vector<4x4x4xf32>
    %cst_42 = arith.constant dense<0xFF800000> : vector<4x4xf32>
    %186 = vector.multi_reduction <maximumf>, %185, %cst_42 [2] : vector<4x4x4xf32> to vector<4x4xf32>
    %187 = vector.shape_cast %186 : vector<4x4xf32> to vector<4x4x1xf32>
    %188 = vector.broadcast %187 : vector<4x4x1xf32> to vector<4x4x4xf32>
    %189 = arith.subf %185, %188 : vector<4x4x4xf32>
    %190 = math.exp %189 : vector<4x4x4xf32>
    %cst_43 = arith.constant dense<0.000000e+00> : vector<4x4xf32>
    %191 = vector.multi_reduction <add>, %190, %cst_43 [2] : vector<4x4x4xf32> to vector<4x4xf32>
    %192 = vector.shape_cast %191 : vector<4x4xf32> to vector<4x4x1xf32>
    %193 = tpu.reciprocal %192 : vector<4x4x1xf32> -> vector<4x4x1xf32>
    %194 = vector.broadcast %193 : vector<4x4x1xf32> to vector<4x4x4xf32>
    %195 = arith.mulf %190, %194 : vector<4x4x4xf32>
    %196 = arith.truncf %195 : vector<4x4x4xf32> to vector<4x4x4xbf16>
    %cst_44 = arith.constant dense<0.000000e+00> : vector<4x4x8xf32>
    %197 = tpu.matmul %196, %184, %cst_44 {dimension_numbers = #tpu.dot_dimension_numbers<[2], [1], [1], [2], [0, 0, 0, 1, 1, 2], [0], [0]>} : vector<4x4x4xbf16>, vector<4x4x8xbf16>, vector<4x4x8xf32> -> vector<4x4x8xf32>
    %198 = vector.extract_strided_slice %197 {offsets = [0, 0, 0], sizes = [1, 4, 8], strides = [1, 1, 1]} : vector<4x4x8xf32> to vector<1x4x8xf32>
    %199 = vector.shape_cast %198 : vector<1x4x8xf32> to vector<4x8xf32>
    %200 = vector.extract_strided_slice %197 {offsets = [1, 0, 0], sizes = [1, 4, 8], strides = [1, 1, 1]} : vector<4x4x8xf32> to vector<1x4x8xf32>
    %201 = vector.shape_cast %200 : vector<1x4x8xf32> to vector<4x8xf32>
    %202 = vector.extract_strided_slice %197 {offsets = [2, 0, 0], sizes = [1, 4, 8], strides = [1, 1, 1]} : vector<4x4x8xf32> to vector<1x4x8xf32>
    %203 = vector.shape_cast %202 : vector<1x4x8xf32> to vector<4x8xf32>
    %204 = vector.extract_strided_slice %197 {offsets = [3, 0, 0], sizes = [1, 4, 8], strides = [1, 1, 1]} : vector<4x4x8xf32> to vector<1x4x8xf32>
    %205 = vector.shape_cast %204 : vector<1x4x8xf32> to vector<4x8xf32>
    %206 = tpu.concatenate %199, %201, %203, %205 in 1 : vector<4x8xf32>, vector<4x8xf32>, vector<4x8xf32>, vector<4x8xf32> -> vector<4x32xf32>
    %207 = arith.truncf %206 : vector<4x32xf32> to vector<4x32xbf16>
    %c7 = arith.constant 7 : index
    %c0_45 = arith.constant 0 : index
    %c0_46 = arith.constant 0 : index
    %208 = vector.load %arg2[%c7, %c0_45, %c0_46] : memref<8x32x32xbf16, #tpu.memory_space<vmem>>, vector<1x32x32xbf16>
    %209 = vector.shape_cast %208 : vector<1x32x32xbf16> to vector<32x32xbf16>
    %cst_47 = arith.constant dense<0.000000e+00> : vector<4x32xf32>
    %210 = tpu.matmul %207, %209, %cst_47 {dimension_numbers = #tpu.dot_dimension_numbers<[1], [0], [0], [1], [0, 0, 1, 1], [], []>} : vector<4x32xbf16>, vector<32x32xbf16>, vector<4x32xf32> -> vector<4x32xf32>
    %211 = vector.extract_strided_slice %4 {offsets = [11, 0], sizes = [1, 32], strides = [1, 1]} : vector<16x32xf32> to vector<1x32xf32>
    %212 = vector.broadcast %211 : vector<1x32xf32> to vector<4x32xf32>
    %213 = arith.addf %210, %212 : vector<4x32xf32>
    %214 = arith.addf %109, %213 : vector<4x32xf32>
    %cst_48 = arith.constant dense<0.000000e+00> : vector<4xf32>
    %215 = vector.multi_reduction <add>, %214, %cst_48 [1] : vector<4x32xf32> to vector<4xf32>
    %216 = vector.shape_cast %215 : vector<4xf32> to vector<4x1xf32>
    %cst_49 = arith.constant 3.200000e+01 : f32
    %217 = vector.broadcast %cst_49 : f32 to vector<4x1xf32>
    %218 = arith.divf %216, %217 : vector<4x1xf32>
    %219 = vector.broadcast %218 : vector<4x1xf32> to vector<4x32xf32>
    %220 = arith.subf %214, %219 : vector<4x32xf32>
    %221 = arith.mulf %220, %220 : vector<4x32xf32>
    %cst_50 = arith.constant dense<0.000000e+00> : vector<4xf32>
    %222 = vector.multi_reduction <add>, %221, %cst_50 [1] : vector<4x32xf32> to vector<4xf32>
    %223 = vector.shape_cast %222 : vector<4xf32> to vector<4x1xf32>
    %cst_51 = arith.constant 3.200000e+01 : f32
    %224 = vector.broadcast %cst_51 : f32 to vector<4x1xf32>
    %225 = arith.divf %223, %224 : vector<4x1xf32>
    %cst_52 = arith.constant 9.99999974E-6 : f32
    %226 = vector.broadcast %cst_52 : f32 to vector<4x1xf32>
    %227 = arith.addf %225, %226 : vector<4x1xf32>
    %228 = math.rsqrt %227 : vector<4x1xf32>
    %229 = vector.broadcast %228 : vector<4x1xf32> to vector<4x32xf32>
    %230 = arith.mulf %220, %229 : vector<4x32xf32>
    %231 = vector.extract_strided_slice %4 {offsets = [12, 0], sizes = [1, 32], strides = [1, 1]} : vector<16x32xf32> to vector<1x32xf32>
    %232 = vector.broadcast %231 : vector<1x32xf32> to vector<4x32xf32>
    %233 = arith.mulf %230, %232 : vector<4x32xf32>
    %234 = vector.extract_strided_slice %4 {offsets = [13, 0], sizes = [1, 32], strides = [1, 1]} : vector<16x32xf32> to vector<1x32xf32>
    %235 = vector.broadcast %234 : vector<1x32xf32> to vector<4x32xf32>
    %236 = arith.addf %233, %235 : vector<4x32xf32>
    %237 = arith.truncf %236 : vector<4x32xf32> to vector<4x32xbf16>
    %c0_53 = arith.constant 0 : index
    %c0_54 = arith.constant 0 : index
    %238 = vector.load %arg3[%c0_53, %c0_54] : memref<32x64xbf16, #tpu.memory_space<vmem>>, vector<32x64xbf16>
    %cst_55 = arith.constant dense<0.000000e+00> : vector<4x64xf32>
    %239 = tpu.matmul %237, %238, %cst_55 {dimension_numbers = #tpu.dot_dimension_numbers<[1], [0], [0], [1], [0, 0, 1, 1], [], []>} : vector<4x32xbf16>, vector<32x64xbf16>, vector<4x64xf32> -> vector<4x64xf32>
    %c0_56 = arith.constant 0 : index
    %c0_57 = arith.constant 0 : index
    %240 = vector.load %arg6[%c0_56, %c0_57] : memref<1x64xf32, #tpu.memory_space<vmem>>, vector<1x64xf32>
    %241 = vector.broadcast %240 : vector<1x64xf32> to vector<4x64xf32>
    %242 = arith.addf %239, %241 : vector<4x64xf32>
    %cst_58 = arith.constant 0.000000e+00 : f32
    %243 = vector.broadcast %cst_58 : f32 to vector<4x64xf32>
    %244 = arith.maximumf %242, %243 : vector<4x64xf32>
    %245 = arith.truncf %244 : vector<4x64xf32> to vector<4x64xbf16>
    %c0_59 = arith.constant 0 : index
    %c0_60 = arith.constant 0 : index
    %246 = vector.load %arg4[%c0_59, %c0_60] : memref<64x32xbf16, #tpu.memory_space<vmem>>, vector<64x32xbf16>
    %cst_61 = arith.constant dense<0.000000e+00> : vector<4x32xf32>
    %247 = tpu.matmul %245, %246, %cst_61 {dimension_numbers = #tpu.dot_dimension_numbers<[1], [0], [0], [1], [0, 0, 1, 1], [], []>} : vector<4x64xbf16>, vector<64x32xbf16>, vector<4x32xf32> -> vector<4x32xf32>
    %248 = vector.extract_strided_slice %4 {offsets = [14, 0], sizes = [1, 32], strides = [1, 1]} : vector<16x32xf32> to vector<1x32xf32>
    %249 = vector.broadcast %248 : vector<1x32xf32> to vector<4x32xf32>
    %250 = arith.addf %247, %249 : vector<4x32xf32>
    %251 = arith.addf %214, %250 : vector<4x32xf32>
    %252 = tpu.concatenate %251, %3 in 0 : vector<4x32xf32>, vector<4x32xf32> -> vector<8x32xf32>
    %c0_62 = arith.constant 0 : index
    %c0_63 = arith.constant 0 : index
    %c0_64 = arith.constant 0 : index
    %253 = vector.load %arg7[%c0_62, %c0_63, %c0_64] : memref<1x8x32xf32, #tpu.memory_space<vmem>>, vector<1x8x32xf32>
    %254 = vector.shape_cast %253 : vector<1x8x32xf32> to vector<8x32xf32>
    %255 = vector.shape_cast %252 : vector<8x32xf32> to vector<1x8x32xf32>
    tpu.vector_store %arg7[%c0_62, %c0_63, %c0_64], %255 {strides = array<i32>} : memref<1x8x32xf32, #tpu.memory_space<vmem>>, vector<1x8x32xf32>,
    return
  }
  func.func @transform_0(%arg0: i32) -> (i32, i32, i32) {
    %c0_i32 = arith.constant 0 : i32
    %c0_i32_0 = arith.constant 0 : i32
    %c0_i32_1 = arith.constant 0 : i32
    return %arg0, %c0_i32, %c0_i32_0 : i32, i32, i32
  }
  func.func @transform_1(%arg0: i32) -> (i32, i32, i32) {
    %c0_i32 = arith.constant 0 : i32
    %c0_i32_0 = arith.constant 0 : i32
    %c0_i32_1 = arith.constant 0 : i32
    %c0_i32_2 = arith.constant 0 : i32
    return %c0_i32, %c0_i32_0, %c0_i32_1 : i32, i32, i32
  }
  func.func @transform_2(%arg0: i32) -> (i32, i32) {
    %c0_i32 = arith.constant 0 : i32
    %c0_i32_0 = arith.constant 0 : i32
    %c0_i32_1 = arith.constant 0 : i32
    return %c0_i32, %c0_i32_0 : i32, i32
  }
  func.func @transform_3(%arg0: i32) -> (i32, i32) {
    %c0_i32 = arith.constant 0 : i32
    %c0_i32_0 = arith.constant 0 : i32
    %c0_i32_1 = arith.constant 0 : i32
    return %c0_i32, %c0_i32_0 : i32, i32
  }
  func.func @transform_4(%arg0: i32) -> (i32, i32) {
    %c0_i32 = arith.constant 0 : i32
    %c0_i32_0 = arith.constant 0 : i32
    %c0_i32_1 = arith.constant 0 : i32
    return %c0_i32, %c0_i32_0 : i32, i32
  }
  func.func @transform_5(%arg0: i32) -> (i32, i32) {
    %c0_i32 = arith.constant 0 : i32
    %c0_i32_0 = arith.constant 0 : i32
    %c0_i32_1 = arith.constant 0 : i32
    return %c0_i32, %c0_i32_0 : i32, i32
  }
  func.func @transform_6(%arg0: i32) -> (i32, i32, i32) {
    %c0_i32 = arith.constant 0 : i32
    %c0_i32_0 = arith.constant 0 : i32
    %c0_i32_1 = arith.constant 0 : i32
    return %arg0, %c0_i32, %c0_i32_0 : i32, i32, i32
  }
}

</mosaic_0001>

<bundles_post_ra>
// kernel: pblock_forward.1
= control target key start
LH: loop header
LB: loop body
LE: loop exit
PB: predicated region body
PF: predicated region fallthrough
CT: control target
= control target key end

     0   :  { %11 = vsyncpa [#allocation3], 0  ;;  %s2501_s21 = smov 0   ;;  %s2862_s0 = inlined_call_operand.vmem [shape: f32[2,8,32], index: 0, kind: input, shape index: {}]   ;;  %s2863_s1 = inlined_call_operand.hbm [shape: bf16[8,32,32], index: 1, kind: input, shape index: {}]   ;;  %s2864_s2 = inlined_call_operand.vmem [shape: bf16[32,64], index: 2, kind: input, shape index: {}]   ;;  %s2865_s3 = inlined_call_operand.vmem [shape: bf16[64,32], index: 3, kind: input, shape index: {}]   ;;  %s2866_s4 = inlined_call_operand.vmem [shape: f32[16,32], index: 4, kind: input, shape index: {}]   ;;  %s2867_s5 = inlined_call_operand.vmem [shape: f32[1,64], index: 5, kind: input, shape index: {}]   ;;  %s2868_s6 = inlined_call_operand.vmem [shape: f32[2,8,32], index: 6, kind: output, shape index: {}]  }
   0x1 LB: > { %s2507_s22 = sadd.s32 4294967295, %s2453_s21   ;;  %p2023_p0 = scmp.ge.s32.totalorder %s2453_s21, 1  ;;  %s2453_s21 = sphi %s2501_s21, %s17_s21  }
   0x2   : > { %p179_p1 = scmp.lt.s32.totalorder %s2453_s21, 3  ;;  %s2455_s23 = smov [#allocation2]  }
   0x3   : > { %s191_s24 = sshll.u32 %s2455_s23, 4  ;;  %p2869_p3 = scmp.eq.s32.totalorder %s2507_s22, 0  ;;  %s192_s24 = int_to_ptr.vmem [resolvable:$true] %s191_s24 }
   0x4   : > { %p2511_p2 = pnand %p2023_p0, %p179_p1  ;;  %s2415_s29 = scalar_lea.hbm %s2863_s1, 2048 }
   0x5   : > { %p2416_p6 = scmp.ne.s32.totalorder %s2863_s1, %s2415_s29  ;;  %p2422_p10 = scmp.lt.u32.totalorder %s2415_s29, %s2863_s1 }
   0x6   : > { %s2871_s25 = scalar_select %p2511_p2, 1, 0 }
   0x7   : > { %p2329_p4 = pneg %p2511_p2 }
   0x9   : > { %p2520_p5 = pnand %p2869_p3, %p2329_p4 }
   0xb   : > { %p2417_p7 = pneg %p2520_p5 }
   0xd   : > { %p2418_p8 = pnand %p2417_p7, %p2416_p6 }
   0xf   : > { %p2419_p9 = pneg %p2418_p8 }
  0x11   : > { %p2424_p11 = pnand %p2422_p10, %p2419_p9 }
  0x13   : > { %2427 = shalt.err (!%p2424_p11)
}
  0x14   : > { %s2428_s10 = scalar_lea.vmem %s192_s24, 2048  ;;  %p2436_p1 = scmp.lt.s32.totalorder %s192_s24, %s192_s24 }
  0x15   : > { %p2429_p12 = scmp.ne.s32.totalorder %s192_s24, %s2428_s10  ;;  %p2437_p4 = scmp.lt.s32.totalorder %s2428_s10, %s2428_s10 }
  0x17   : > { %p2431_p13 = pnand %p2429_p12, %p2417_p7  ;;  %p2438_p3 = por %p2437_p4, %p2436_p1 }
  0x19   : > { %p2432_p0 = pneg %p2431_p13 }
  0x1b   : > { %p2439_p2 = pnand %p2438_p3, %p2432_p0 }
  0x1d   : > { %2442 = shalt.err (!%p2439_p2)
}
  0x1e   : > { %s2456_s11 = smov 64   ;;  %s2457_s12 = smov 4  }
  0x1f   : > { %2332 = dma.hbm_to_vmem [thread:$0]  (!%p2520_p5), %s2863_s1, 2048, %s192_s24, [#allocation3], %s2456_s11, %s2456_s11, %s2457_s12  }
  0x20   : > { %p2873_p6 = scmp.ne.s32.totalorder %s2871_s25, 0 }
  0x21   : > { %p2874_p8 = scmp.eq.s32.totalorder (!%p2873_p6), %s2507_s22, 0 }
  0x22   : > { %226 = sbr.rel (%p2873_p6) target bundleno = 4356 (0x1104), region = 44 }
  0x29   : > { %2448 = dma.done.wait (%p2874_p8), [#allocation3], 2048   ;;  %p2875_p7 = pmov %p2874_p8 }
  0x2a   : > { %p254_p2 = scmp.lt.s32.totalorder %s2507_s22, 1  ;;  %vm266_vm0 = vcmask 257024   ;;  %v2354_v7 = vld [vmem:[#allocation2 + $0x10] sm:$0xff]   ;;  %v2458_v8 = vmov 0.0   ;;  %v2355_v9 = vld [vmem:[#allocation2 + $0x18] sm:$0xff]   ;;  %v2356_v11 = vld [vmem:[#allocation2] sm:$0xff]   ;;  %v281_v16 = vlaneseq }
  0x2b   : > { %2450 = vsyncadd (%p2875_p7), [#allocation3], 4294965248  ;;  %2153 = vmatprep.subr.bf16.mxu1 %v2458_v8  ;;  %2145 = vmatprep.subr.bf16.mxu0 %v2458_v8  ;;  %vm2459_vm1 = vmmov 0   ;;  %vm312_vm2 = vcmask 261120   ;;  %v2357_v13 = vld [vmem:[#allocation2 + $0x8] sm:$0xff]   ;;  %v2586_v20 = vld [vmem:[%s2866_s4] sm:$0xff] }
  0x2c   : > { %s2877_s22 = smov (!%p254_p2, %s2507_s22), 1  ;;  %2154 = vmatpush3.bf16.msra.mxu1 %v2354_v7  ;;  %2157 = vmatprep.mubr.msk.bf16.mxu1 %vm2459_vm1, %v2458_v8  ;;  %v2580_v18 = vshrl.u32 %v281_v16, 7  ;;  %s2460_s23 = smov 120   ;;  %vm527_vm3 = vcmask 64512   ;;  %v2358_v38 = vld [vmem:[#allocation2 + $0x20] sm:$0xff]   ;;  %v2359_v39 = vld [vmem:[#allocation2 + $0x28] sm:$0xff]  }
  0x2d   : > { %s2028_s15 = sshll.u32 %s2877_s22, 3  ;;  %2155 = vmatprep.subr.bf16.mxu1 %v2458_v8  ;;  %2149 = vmatprep.mubr.msk.bf16.mxu0 %vm2459_vm1, %v2458_v8  ;;  %s2461_s24 = smov 112   ;;  %vm765_vm4 = vcmask 1041408   ;;  %vm712_vm5 = vcmask 27648   ;;  %vm761_vm6 = vcmask 31744   ;;  %vm960_vm7 = vcmask 130048  }
  0x2e   : > { %s2556_s18 = scalar_lea.vmem %s2862_s0, %s2028_s15  ;;  %2146 = vmatpush3.bf16.msra.mxu0 %v2356_v11  ;;  %v283_v19 = vsub.s32 0, %v2580_v18  ;;  %v288_v21 = vsub.s32 1, %v2580_v18  ;;  %v365_v29 = vsub.s32 3, %v2580_v18  ;;  %s2462_s25 = smov 104   ;;  %v298_v43 = vsub.s32 2, %v2580_v18 }
  0x2f   : > { %v2559_v0 = vld [vmem:[%s2556_s18] sm:$0xff]  ;;  %2147 = vmatprep.subr.bf16.mxu0 %v2458_v8  ;;  %v431_v59 = vsub.s32 4, %v2580_v18  ;;  %s2463_s26 = smov 16   ;;  %s2464_s27 = smov 8   ;;  %vm962_vm8 = vcmask 195584   ;;  %vm1908_vm9 = vcmask 523264  }
  0x30   : > { %v267_v1 = vsel %vm266_vm0, %v2559_v0, 0.0  ;;  %v357_v10 = vpack.c.bf16 %v2559_v0, %v2559_v0  ;;  %2156 = vmatpush3.bf16.msra.mxu1 %v2355_v9  ;;  %v284_v22 = vrot.slane %v2586_v20, %v283_v19  ;;  %v289_v25 = vrot.slane %v2586_v20, %v288_v21  ;;  %s2465_s28 = smov 24  }
  0x31   : > { %268 = vadd.xlane.f32.xlu0 %v267_v1  ;;  %2169 = vmatprep.subr.bf16.mxu1 %v2458_v8  ;;  %v366_v30 = vrot.slane %v2586_v20, %v365_v29  ;;  %v299_v44 = vrot.slane %v2586_v20, %v298_v43  ;;  %v432_v60 = vrot.slane %v2586_v20, %v431_v59  ;;  %vm1953_vm10 = vcmask 1043456  }
  0x32   : > { %v368_v12 = vrot.slane %v357_v10, 2  ;;  %2148 = vmatpush3.bf16.msra.mxu0 %v2357_v13 }
  0x33   : > { %2161 = vmatprep.subr.bf16.mxu0 %v2458_v8 }
  0x34   : > { %2158 = vmatmul.mubr.msk.bf16.vlgmr.msra.gmra.mrb[0].mxu1 %vm312_vm2, %v368_v12 }
  0x35   : > { %2171 = vmatprep.mubr.msk.bf16.mxu1 %vm2459_vm1, %v2458_v8 }
  0xbe   : > { %v269_v2 = vpop.xlane.xlu0 %268 }
  0xbf   : > { %v271_v3 = vmul.f32 0.03125, %v269_v2 }
  0xc1   : > { %v272_v4 = vsub.f32 %v2559_v0, %v271_v3 }
  0xc3   : > { %v273_v5 = vmul.f32 %v272_v4, %v272_v4 }
  0xc5   : > { %v274_v6 = vsel %vm266_vm0, %v273_v5, 0.0 }
  0xc6   : > { %275 = vadd.xlane.f32.xlu0 %v274_v6 }
 0x107   : > { %v418_v31 = vpop.f32.mrb[0].mxu1 }
 0x108   : > { %v419_v32 = vadd.f32 %v418_v31, %v366_v30  ;;  %v2159_v33 = vpop.f32.mrb[1].mxu1 }
 0x109   : > { %v421_v34 = vpop.f32.mrb[2].mxu1 }
 0x10a   : > { %500 = vrot.lane.b32.xlu1 %v419_v32, %s2460_s23  ;;  %v2160_v35 = vpop.f32.mrb[3].mxu1  ;;  %v509_v36 = vpack.c.bf16 %v419_v32, %v419_v32 }
 0x10c   : > { %v532_v37 = vsel %vm527_vm3, %v509_v36, 0 }
 0x10d   : > { %2170 = vmatpush3.bf16.xpose.msra.mxu1 %v532_v37 }
 0x10e   : > { %503 = vrot.lane.b32.xlu1 %v419_v32, %s2461_s24  ;;  %2181 = vmatprep.subr.bf16.mxu1 %v2458_v8 }
 0x112   : > { %506 = vrot.lane.b32.xlu1 %v419_v32, %s2462_s25 }
 0x153   : > { %v276_v14 = vpop.xlane.xlu0 %275 }
 0x154   : > { %v277_v15 = vmul.f32 0.03125, %v276_v14 }
 0x156   : > { %v278_v17 = vadd.f32 1e-05, %v277_v15 }
 0x158   : > { %2376 = vrsqrt.f32 %v278_v17 }
 0x162   : > { %v2377_v23 = vpop.eup %2376 }
 0x163   : > { %v280_v24 = vmul.f32 %v2377_v23, %v272_v4 }
 0x165   : > { %v285_v26 = vmul.f32 %v284_v22, %v280_v24 }
 0x167   : > { %v290_v27 = vadd.f32 %v289_v25, %v285_v26 }
 0x169   : > { %v291_v28 = vpack.c.bf16 %v290_v27, %v290_v27 }
 0x16b   : > { %2150 = vmatmul.mubr.msk.bf16.vlgmr.msra.gmra.mrb[0].mxu0 %vm312_vm2, %v291_v28 }
 0x16c   : > { %2165 = vmatprep.mubr.msk.bf16.mxu0 %vm2459_vm1, %v2458_v8  ;;  %2162 = vmatpush3.bf16.msra.mxu0 %v2358_v38 }
 0x16d   : > { %2163 = vmatprep.subr.bf16.mxu0 %v2458_v8 }
 0x170   : > { %2164 = vmatpush3.bf16.msra.mxu0 %v2359_v39 }
 0x171   : > { %2175 = vmatprep.subr.bf16.mxu0 %v2458_v8 }
 0x173   : > { %2166 = vmatmul.mubr.msk.bf16.vlgmr.msra.gmra.mrb[4].mxu0 %vm312_vm2, %v368_v12 }
 0x174   : > { %2177 = vmatprep.mubr.msk.bf16.mxu0 %vm2459_vm1, %v2458_v8 }
 0x17c   : > { %v501_v40 = vpop.permute.xlu1 %500 }
 0x17d   : > { %v510_v41 = vpack.c.bf16 %v501_v40, %v501_v40 }
 0x17f   : > { %v578_v42 = vsel %vm527_vm3, %v510_v41, 0 }
 0x180   : > { %2176 = vmatpush3.bf16.xpose.msra.mxu0 %v578_v42  ;;  %v504_v46 = vpop.permute.xlu1 %503 }
 0x181   : > { %2187 = vmatprep.subr.bf16.mxu0 %v2458_v8  ;;  %v511_v49 = vpack.c.bf16 %v504_v46, %v504_v46 }
 0x183   : > { %v624_v54 = vsel %vm527_vm3, %v511_v49, 0 }
 0x184   : > { %v507_v62 = vpop.permute.xlu1 %506 }
 0x185   : > { %v512_v1 = vpack.c.bf16 %v507_v62, %v507_v62 }
 0x187   : > { %v670_v7 = vsel %vm527_vm3, %v512_v1, 0 }
 0x23e   : > { %v350_v45 = vpop.f32.mrb[0].mxu0 }
 0x23f   : > { %v351_v47 = vadd.f32 %v350_v45, %v299_v44  ;;  %v2151_v48 = vpop.f32.mrb[1].mxu0 }
 0x240   : > { %v353_v50 = vpop.f32.mrb[2].mxu0 }
 0x241   : > { %v356_v51 = vmul.f32 0.35355338, %v351_v47  ;;  %v2152_v52 = vpop.f32.mrb[3].mxu0 }
 0x243   : > { %v495_v53 = vpack.c.bf16 %v356_v51, %v356_v51  ;;  %489 = vrot.lane.b32.xlu1 %v356_v51, %s2461_s24  ;;  %486 = vrot.lane.b32.xlu0 %v356_v51, %s2460_s23 }
 0x245   : > { %2172 = vmatmul.mubr.msk.bf16.vlgmr.msra.gmra.mrb[4].mxu1 %vm527_vm3, %v495_v53 }
 0x246   : > { %2182 = vmatpush3.bf16.xpose.msra.mxu1 %v624_v54  ;;  %2183 = vmatprep.mubr.msk.bf16.mxu1 %vm2459_vm1, %v2458_v8  ;;  %v479_v55 = vpop.f32.mrb[4].mxu0 }
 0x247   : > { %492 = vrot.lane.b32.xlu1 %v356_v51, %s2462_s25  ;;  %2193 = vmatprep.subr.bf16.mxu1 %v2458_v8  ;;  %v2167_v56 = vpop.f32.mrb[5].mxu0  ;;  %v2630_v61 = vadd.f32 %v479_v55, %v432_v60 }
 0x248   : > { %v482_v57 = vpop.f32.mrb[6].mxu0 }
 0x249   : > { %v2168_v58 = vpop.f32.mrb[7].mxu0  ;;  %v523_v63 = vpack.c.bf16 %v2630_v61, %v2630_v61 }
 0x24b   : > { %v767_v6 = vsel %vm765_vm4, %v523_v63, 0 }
 0x2b5   : > { %v490_v2 = vpop.permute.xlu1 %489  ;;  %v487_v3 = vpop.permute.xlu0 %486 }
 0x2b6   : > { %v497_v4 = vpack.c.bf16 %v490_v2, %v490_v2  ;;  %v496_v5 = vpack.c.bf16 %v487_v3, %v487_v3 }
 0x2b8   : > { %2178 = vmatmul.mubr.msk.bf16.vlgmr.msra.gmra.mrb[8].mxu0 %vm527_vm3, %v496_v5  ;;  %2184 = vmatmul.mubr.msk.bf16.vlgmr.msra.gmra.mrb[8].mxu1 %vm527_vm3, %v497_v4 }
 0x2b9   : > { %2188 = vmatpush3.bf16.xpose.msra.mxu0 %v670_v7  ;;  %2189 = vmatprep.mubr.msk.bf16.mxu0 %vm2459_vm1, %v2458_v8  ;;  %v493_v9 = vpop.permute.xlu1 %492 }
 0x2ba   : > { %2194 = vmatpush3.bf16.msra.mxu1 %v767_v6  ;;  %2195 = vmatprep.mubr.msk.bf16.mxu1 %vm2459_vm1, %v2458_v8  ;;  %v498_v10 = vpack.c.bf16 %v493_v9, %v493_v9 }
 0x2bb   : > { %2199 = vmatprep.subr.bf16.mxu0 %v2458_v8  ;;  %2205 = vmatprep.subr.bf16.mxu1 %v2458_v8 }
 0x2c0   : > { %2190 = vmatmul.mubr.msk.bf16.vlgmr.msra.gmra.mrb[12].mxu0 %vm527_vm3, %v498_v10 }
 0x2c1   : > { %2201 = vmatprep.mubr.msk.bf16.mxu0 %vm2459_vm1, %v2458_v8 }
 0x318   : > { %v568_v11 = vpop.f32.mrb[4].mxu1 }
 0x319   : > { %v2173_v12 = vpop.f32.mrb[5].mxu1  ;;  %v713_v13 = vsel %vm712_vm5, %v568_v11, -inf }
 0x31a   : > { %714 = vmax.xlane.f32.xlu1 %v713_v13  ;;  %v571_v14 = vpop.f32.mrb[6].mxu1 }
 0x31b   : > { %v2174_v15 = vpop.f32.mrb[7].mxu1 }
 0x38b   : > { %v614_v16 = vpop.f32.mrb[8].mxu0  ;;  %v660_v17 = vpop.f32.mrb[8].mxu1 }
 0x38c   : > { %v2179_v22 = vpop.f32.mrb[9].mxu0  ;;  %v2185_v23 = vpop.f32.mrb[9].mxu1  ;;  %v719_v24 = vsel %vm712_vm5, %v660_v17, -inf  ;;  %v716_v25 = vsel %vm712_vm5, %v614_v16, -inf }
 0x38d   : > { %720 = vmax.xlane.f32.xlu1 %v719_v24  ;;  %v663_v26 = vpop.f32.mrb[10].mxu1  ;;  %717 = vmax.xlane.f32.xlu0 %v716_v25  ;;  %v617_v27 = vpop.f32.mrb[10].mxu0 }
 0x38e   : > { %v2180_v28 = vpop.f32.mrb[11].mxu0  ;;  %v2186_v30 = vpop.f32.mrb[11].mxu1 }
 0x38f   : > { %v2360_v30 = vld [vmem:[#allocation2 + $0x30] sm:$0xff]  }
 0x393   : > { %v706_v31 = vpop.f32.mrb[12].mxu0 }
 0x394   : > { %v2191_v32 = vpop.f32.mrb[13].mxu0  ;;  %v722_v33 = vsel %vm712_vm5, %v706_v31, -inf }
 0x395   : > { %723 = vmax.xlane.f32.xlu1 %v722_v33  ;;  %v709_v34 = vpop.f32.mrb[14].mxu0 }
 0x396   : > { %v2192_v35 = vpop.f32.mrb[15].mxu0 }
 0x3a7   : > { %v715_v36 = vpop.xlane.xlu1 %714 }
 0x3a8   : > { %v725_v37 = vsub.f32 %v568_v11, %v715_v36 }
 0x3aa   : > { %v729_v38 = vmul.f32 1.442695, %v725_v37 }
 0x3ac   : > { %2378 = vpow2.f32 %v729_v38 }
 0x3b6   : > { %v2379_v39 = vpop.eup %2378 }
 0x3b7   : > { %v737_v40 = vsel %vm712_vm5, %v2379_v39, 0.0 }
 0x3b8   : > { %738 = vadd.xlane.f32.xlu0 %v737_v40 }
 0x41a   : > { %v721_v41 = vpop.xlane.xlu1 %720  ;;  %v718_v42 = vpop.xlane.xlu0 %717 }
 0x41b   : > { %v727_v44 = vsub.f32 %v660_v17, %v721_v41  ;;  %v726_v45 = vsub.f32 %v614_v16, %v718_v42 }
 0x41d   : > { %v733_v46 = vmul.f32 1.442695, %v727_v44  ;;  %v731_v47 = vmul.f32 1.442695, %v726_v45 }
 0x41f   : > { %2380 = vpow2.f32 %v733_v46 }
 0x420   : > { %2382 = vpow2.f32 %v731_v47 }
 0x422   : > { %v724_v53 = vpop.xlane.xlu1 %723 }
 0x423   : > { %v728_v54 = vsub.f32 %v706_v31, %v724_v53 }
 0x425   : > { %v735_v55 = vmul.f32 1.442695, %v728_v54 }
 0x429   : > { %v2381_v48 = vpop.eup %2380 }
 0x42a   : > { %v2383_v49 = vpop.eup %2382  ;;  %v743_v50 = vsel %vm712_vm5, %v2381_v48, 0.0 }
 0x42b   : > { %744 = vadd.xlane.f32.xlu0 %v743_v50  ;;  %v740_v51 = vsel %vm712_vm5, %v2383_v49, 0.0 }
 0x42c   : > { %741 = vadd.xlane.f32.xlu1 %v740_v51 }
 0x43d   : > { %517 = vrot.lane.b32.xlu1 %v2630_v61, %s2461_s24 }
 0x441   : > { %514 = vrot.lane.b32.xlu0 %v2630_v61, %s2460_s23 }
 0x445   : > { %v739_v52 = vpop.xlane.xlu0 %738 }
 0x446   : > { %2384 = vrcp.f32 %v739_v52  ;;  %v972_v52 = vsub.s32 5, %v2580_v18 }
 0x447   : > { %2386 = vpow2.f32 %v735_v55 }
 0x448   : > { %v973_v53 = vrot.slane %v2586_v20, %v972_v52 }
 0x450   : > { %v2385_v56 = vpop.eup %2384 }
 0x451   : > { %v753_v57 = vmul.f32 %v2385_v56, %v2379_v39  ;;  %v2387_v60 = vpop.eup %2386  ;;  %v2361_v39 = vld [vmem:[#allocation2 + $0x38] sm:$0xff]  }
 0x452   : > { %v746_v62 = vsel %vm712_vm5, %v2387_v60, 0.0 }
 0x453   : > { %v757_v58 = vpack.c.bf16 %v753_v57, %v753_v57 }
 0x455   : > { %2196 = vmatmul.mubr.msk.bf16.vlgmr.msra.gmra.mrb[12].mxu1 %vm761_vm6, %v757_v58 }
 0x456   : > { %2207 = vmatprep.mubr.msk.bf16.mxu1 %vm2459_vm1, %v2458_v8 }
 0x461   : > { %747 = vadd.xlane.f32.xlu1 %v746_v62 }
 0x472   : > { %520 = vrot.lane.b32.xlu1 %v2630_v61, %s2462_s25 }
 0x4b8   : > { %v745_v63 = vpop.xlane.xlu0 %744 }
 0x4b9   : > { %2388 = vrcp.f32 %v745_v63  ;;  %v742_v1 = vpop.xlane.xlu1 %741 }
 0x4ba   : > { %2390 = vrcp.f32 %v742_v1 }
 0x4bc   : > { %v515_v2 = vpop.permute.xlu0 %514 }
 0x4bd   : > { %v524_v3 = vpack.c.bf16 %v515_v2, %v515_v2  ;;  %v518_v4 = vpop.permute.xlu1 %517 }
 0x4be   : > { %v525_v5 = vpack.c.bf16 %v518_v4, %v518_v4 }
 0x4bf   : > { %v813_v6 = vsel %vm765_vm4, %v524_v3, 0 }
 0x4c0   : > { %v859_v7 = vsel %vm765_vm4, %v525_v5, 0  ;;  %2200 = vmatpush3.bf16.msra.mxu0 %v813_v6  ;;  %v2362_v5 = vld [vmem:[#allocation2 + $0x40] sm:$0xff]   ;;  %v2363_v6 = vld [vmem:[#allocation2 + $0x50] sm:$0xff]  }
 0x4c1   : > { %2206 = vmatpush3.bf16.msra.mxu1 %v859_v7  ;;  %2211 = vmatprep.subr.bf16.mxu0 %v2458_v8  ;;  %v2364_v7 = vld [vmem:[#allocation2 + $0x48] sm:$0xff]  }
 0x4c2   : > { %2217 = vmatprep.subr.bf16.mxu1 %v2458_v8 }
 0x4c3   : > { %v2389_v9 = vpop.eup %2388 }
 0x4c4   : > { %v2391_v61 = vpop.eup %2390  ;;  %v755_v10 = vmul.f32 %v2389_v9, %v2381_v48 }
 0x4c5   : > { %v754_v11 = vmul.f32 %v2391_v61, %v2383_v49 }
 0x4c6   : > { %v759_v12 = vpack.c.bf16 %v755_v10, %v755_v10 }
 0x4c7   : > { %v758_v13 = vpack.c.bf16 %v754_v11, %v754_v11  ;;  %v1045_v11 = vsub.s32 6, %v2580_v18 }
 0x4c8   : > { %2208 = vmatmul.mubr.msk.bf16.vlgmr.msra.gmra.mrb[16].mxu1 %vm761_vm6, %v759_v12  ;;  %v1050_v12 = vsub.s32 7, %v2580_v18 }
 0x4c9   : > { %2202 = vmatmul.mubr.msk.bf16.vlgmr.msra.gmra.mrb[16].mxu0 %vm761_vm6, %v758_v13  ;;  %2221 = vmatprep.mubr.msk.bf16.mxu1 %vm2459_vm1, %v2458_v8  ;;  %v1046_v13 = vrot.slane %v2586_v20, %v1045_v11 }
 0x4ca   : > { %2213 = vmatprep.mubr.msk.bf16.mxu0 %vm2459_vm1, %v2458_v8  ;;  %2218 = vmatpush3.bf16.msra.mxu1 %v2360_v30 }
 0x4cb   : > { %2219 = vmatprep.subr.bf16.mxu1 %v2458_v8 }
 0x4ce   : > { %2220 = vmatpush3.bf16.msra.mxu1 %v2361_v39 }
 0x4cf   : > { %2233 = vmatprep.subr.bf16.mxu1 %v2458_v8 }
 0x4ee   : > { %v748_v14 = vpop.xlane.xlu1 %747 }
 0x4ef   : > { %2392 = vrcp.f32 %v748_v14 }
 0x4f2   : > { %v521_v15 = vpop.permute.xlu1 %520 }
 0x4f3   : > { %v526_v16 = vpack.c.bf16 %v521_v15, %v521_v15 }
 0x4f5   : > { %v905_v17 = vsel %vm765_vm4, %v526_v16, 0  ;;  %v1051_v16 = vrot.slane %v2586_v20, %v1050_v12  ;;  %v2725_v20 = vld [vmem:[%s2866_s4 + $0x8] sm:$0xff] }
 0x4f6   : > { %2212 = vmatpush3.bf16.msra.mxu0 %v905_v17 }
 0x4f7   : > { %2225 = vmatprep.subr.bf16.mxu0 %v2458_v8 }
 0x4f9   : > { %v2393_v22 = vpop.eup %2392 }
 0x4fa   : > { %v756_v23 = vmul.f32 %v2393_v22, %v2387_v60 }
 0x4fc   : > { %v760_v24 = vpack.c.bf16 %v756_v23, %v756_v23  ;;  %v2366_v23 = vld [vmem:[#allocation2 + $0x60] sm:$0xff]  }
 0x4fe   : > { %2214 = vmatmul.mubr.msk.bf16.vlgmr.msra.gmra.mrb[20].mxu0 %vm761_vm6, %v760_v24 }
 0x4ff   : > { %2229 = vmatprep.mubr.msk.bf16.mxu0 %vm2459_vm1, %v2458_v8  ;;  %2226 = vmatpush3.bf16.msra.mxu0 %v2362_v5 }
 0x500   : > { %2227 = vmatprep.subr.bf16.mxu0 %v2458_v8 }
 0x503   : > { %2228 = vmatpush3.bf16.msra.mxu0 %v2364_v7 }
 0x504   : > { %2241 = vmatprep.subr.bf16.mxu0 %v2458_v8 }
 0x528   : > { %v803_v25 = vpop.f32.mrb[12].mxu1 }
 0x529   : > { %v2197_v26 = vpop.f32.mrb[13].mxu1 }
 0x52a   : > { %v806_v27 = vpop.f32.mrb[14].mxu1  ;;  %v1062_v26 = vrot.slane %v2725_v20, %v283_v19 }
 0x52b   : > { %v2198_v28 = vpop.f32.mrb[15].mxu1  ;;  %v1127_v27 = vrot.slane %v2725_v20, %v288_v21 }
 0x59b   : > { %v895_v31 = vpop.f32.mrb[16].mxu1 }
 0x59c   : > { %v849_v32 = vpop.f32.mrb[16].mxu0  ;;  %952 = vrot.lane.b32.xlu1 %v895_v31, %s2463_s26  ;;  %v2209_v33 = vpop.f32.mrb[17].mxu1 }
 0x59d   : > { %948 = vrot.lane.b32.xlu0 %v849_v32, %s2464_s27  ;;  %v2203_v34 = vpop.f32.mrb[17].mxu0  ;;  %v898_v35 = vpop.f32.mrb[18].mxu1 }
 0x59e   : > { %v852_v36 = vpop.f32.mrb[18].mxu0  ;;  %v2210_v37 = vpop.f32.mrb[19].mxu1 }
 0x59f   : > { %v2204_v38 = vpop.f32.mrb[19].mxu0 }
 0x5d1   : > { %v941_v40 = vpop.f32.mrb[20].mxu0 }
 0x5d2   : > { %956 = vrot.lane.b32.xlu0 %v941_v40, %s2465_s28  ;;  %v2215_v41 = vpop.f32.mrb[21].mxu0 }
 0x5d3   : > { %v944_v42 = vpop.f32.mrb[22].mxu0 }
 0x5d4   : > { %v2216_v44 = vpop.f32.mrb[23].mxu0 }
 0x60e   : > { %v953_v46 = vpop.permute.xlu1 %952 }
 0x60f   : > { %v949_v45 = vpop.permute.xlu0 %948 }
 0x610   : > { %v959_v47 = vsel %vm527_vm3, %v803_v25, %v949_v45  ;;  %v2367_v25 = vld [vmem:[#allocation2 + $0x68] sm:$0xff]  }
 0x611   : > { %v961_v48 = vsel %vm960_vm7, %v959_v47, %v953_v46  ;;  %v1188_v46 = vrot.slane %v2725_v20, %v298_v43 }
 0x644   : > { %v957_v49 = vpop.permute.xlu0 %956 }
 0x645   : > { %v963_v50 = vsel %vm962_vm8, %v961_v48, %v957_v49 }
 0x646   : > { %v964_v51 = vpack.c.bf16 %v963_v50, %v963_v50 }
 0x648   : > { %2222 = vmatmul.mubr.msk.bf16.vlgmr.msra.gmra.mrb[20].mxu1 %vm312_vm2, %v964_v51 }
 0x649   : > { %2237 = vmatprep.mubr.msk.bf16.mxu1 %vm2459_vm1, %v2458_v8  ;;  %2234 = vmatpush3.bf16.msra.mxu1 %v2363_v6 }
 0x64a   : > { %2235 = vmatprep.subr.bf16.mxu1 %v2458_v8 }
 0x71b   : > { %v1023_v54 = vpop.f32.mrb[20].mxu1 }
 0x71c   : > { %v1024_v55 = vadd.f32 %v1023_v54, %v973_v53  ;;  %v2223_v56 = vpop.f32.mrb[21].mxu1 }
 0x71d   : > { %v1026_v57 = vpop.f32.mrb[22].mxu1 }
 0x71e   : > { %v2695_v58 = vadd.f32 %v1024_v55, %v2559_v0  ;;  %v2224_v60 = vpop.f32.mrb[23].mxu1  ;;  %v2365_v0 = vld [vmem:[#allocation2 + $0x58] sm:$0xff]  }
 0x71f   : > { %2236 = vmatpush3.bf16.msra.mxu1 %v2365_v0 }
 0x720   : > { %v1030_v62 = vsel %vm266_vm0, %v2695_v58, 0.0  ;;  %2249 = vmatprep.subr.bf16.mxu1 %v2458_v8 }
 0x721   : > { %1031 = vadd.xlane.f32.xlu1 %v1030_v62 }
 0x7ae   : > { %v1032_v63 = vpop.xlane.xlu1 %1031 }
 0x7af   : > { %v1033_v1 = vmul.f32 0.03125, %v1032_v63 }
 0x7b1   : > { %v1034_v2 = vsub.f32 %v2695_v58, %v1033_v1 }
 0x7b3   : > { %v1035_v3 = vmul.f32 %v1034_v2, %v1034_v2 }
 0x7b5   : > { %v1036_v4 = vsel %vm266_vm0, %v1035_v3, 0.0 }
 0x7b6   : > { %1037 = vadd.xlane.f32.xlu0 %v1036_v4 }
 0x843   : > { %v1038_v9 = vpop.xlane.xlu0 %1037 }
 0x844   : > { %v1039_v61 = vmul.f32 0.03125, %v1038_v9 }
 0x846   : > { %v1040_v10 = vadd.f32 1e-05, %v1039_v61 }
 0x848   : > { %2394 = vrsqrt.f32 %v1040_v10 }
 0x852   : > { %v2395_v14 = vpop.eup %2394 }
 0x853   : > { %v1042_v15 = vmul.f32 %v2395_v14, %v1034_v2 }
 0x855   : > { %v1047_v17 = vmul.f32 %v1046_v13, %v1042_v15 }
 0x857   : > { %v1052_v22 = vadd.f32 %v1051_v16, %v1047_v17 }
 0x859   : > { %v1053_v24 = vpack.c.bf16 %v1052_v22, %v1052_v22 }
 0x85b   : > { %2230 = vmatmul.mubr.msk.bf16.vlgmr.msra.gmra.mrb[24].mxu0 %vm312_vm2, %v1053_v24  ;;  %2238 = vmatmul.mubr.msk.bf16.vlgmr.msra.gmra.mrb[24].mxu1 %vm312_vm2, %v1053_v24 }
 0x85c   : > { %2242 = vmatpush3.bf16.msra.mxu0 %v2366_v23  ;;  %2245 = vmatprep.mubr.msk.bf16.mxu0 %vm2459_vm1, %v2458_v8 }
 0x85d   : > { %2243 = vmatprep.subr.bf16.mxu0 %v2458_v8  ;;  %2251 = vmatprep.mubr.msk.bf16.mxu1 %vm2459_vm1, %v2458_v8 }
 0x860   : > { %2244 = vmatpush3.bf16.msra.mxu0 %v2367_v25 }
 0x861   : > { %2255 = vmatprep.subr.bf16.mxu0 %v2458_v8 }
 0x863   : > { %2246 = vmatmul.mubr.msk.bf16.vlgmr.msra.gmra.mrb[28].mxu0 %vm312_vm2, %v1053_v24 }
 0x864   : > { %2257 = vmatprep.mubr.msk.bf16.mxu0 %vm2459_vm1, %v2458_v8 }
 0x92e   : > { %v1112_v28 = vpop.f32.mrb[24].mxu0  ;;  %v1174_v30 = vpop.f32.mrb[24].mxu1 }
 0x92f   : > { %v1113_v31 = vadd.f32 %v1112_v28, %v1062_v26  ;;  %v1175_v32 = vadd.f32 %v1174_v30, %v1127_v27  ;;  %v2231_v33 = vpop.f32.mrb[25].mxu0  ;;  %v2239_v34 = vpop.f32.mrb[25].mxu1 }
 0x930   : > { %v1115_v35 = vpop.f32.mrb[26].mxu0  ;;  %v1177_v36 = vpop.f32.mrb[26].mxu1 }
 0x931   : > { %1259 = vrot.lane.b32.xlu1 %v1175_v32, %s2461_s24  ;;  %1256 = vrot.lane.b32.xlu0 %v1175_v32, %s2460_s23  ;;  %v2232_v37 = vpop.f32.mrb[27].mxu0  ;;  %v2240_v38 = vpop.f32.mrb[27].mxu1  ;;  %v1265_v39 = vpack.c.bf16 %v1175_v32, %v1175_v32  ;;  %v1118_v19 = vmul.f32 0.35355338, %v1113_v31 }
 0x933   : > { %v1287_v40 = vsel %vm527_vm3, %v1265_v39, 0  ;;  %v1251_v44 = vpack.c.bf16 %v1118_v19, %v1118_v19 }
 0x934   : > { %2250 = vmatpush3.bf16.xpose.msra.mxu1 %v1287_v40 }
 0x935   : > { %1262 = vrot.lane.b32.xlu0 %v1175_v32, %s2462_s25  ;;  %1242 = vrot.lane.b32.xlu1 %v1118_v19, %s2460_s23 }
 0x936   : > { %v1235_v21 = vpop.f32.mrb[28].mxu0  ;;  %2261 = vmatprep.subr.bf16.mxu1 %v2458_v8 }
 0x937   : > { %v2247_v41 = vpop.f32.mrb[29].mxu0  ;;  %v2747_v51 = vadd.f32 %v1235_v21, %v1188_v46 }
 0x938   : > { %v1238_v42 = vpop.f32.mrb[30].mxu0 }
 0x939   : > { %1248 = vrot.lane.b32.xlu0 %v1118_v19, %s2462_s25  ;;  %1245 = vrot.lane.b32.xlu1 %v1118_v19, %s2461_s24  ;;  %v2248_v45 = vpop.f32.mrb[31].mxu0  ;;  %v1279_v43 = vpack.c.bf16 %v2747_v51, %v2747_v51 }
 0x93b   : > { %2252 = vmatmul.mubr.msk.bf16.vlgmr.msra.gmra.mrb[28].mxu1 %vm527_vm3, %v1251_v44  ;;  %v1519_v2 = vsel %vm765_vm4, %v1279_v43, 0 }
 0x93c   : > { %2263 = vmatprep.mubr.msk.bf16.mxu1 %vm2459_vm1, %v2458_v8 }
 0x9a3   : > { %v1260_v47 = vpop.permute.xlu1 %1259  ;;  %v1257_v48 = vpop.permute.xlu0 %1256 }
 0x9a4   : > { %v1267_v49 = vpack.c.bf16 %v1260_v47, %v1260_v47  ;;  %v1266_v50 = vpack.c.bf16 %v1257_v48, %v1257_v48 }
 0x9a6   : > { %v1379_v53 = vsel %vm527_vm3, %v1267_v49, 0  ;;  %v1333_v54 = vsel %vm527_vm3, %v1266_v50, 0 }
 0x9a7   : > { %2256 = vmatpush3.bf16.xpose.msra.mxu0 %v1333_v54  ;;  %v1263_v55 = vpop.permute.xlu0 %1262  ;;  %v1243_v56 = vpop.permute.xlu1 %1242  ;;  %2262 = vmatpush3.bf16.xpose.msra.mxu1 %v1379_v53 }
 0x9a8   : > { %2267 = vmatprep.subr.bf16.mxu0 %v2458_v8  ;;  %2273 = vmatprep.subr.bf16.mxu1 %v2458_v8  ;;  %v1268_v57 = vpack.c.bf16 %v1263_v55, %v1263_v55  ;;  %v1252_v62 = vpack.c.bf16 %v1243_v56, %v1243_v56 }
 0x9aa   : > { %v1425_v1 = vsel %vm527_vm3, %v1268_v57, 0 }
 0x9ab   : > { %v1246_v60 = vpop.permute.xlu1 %1245  ;;  %v1249_v3 = vpop.permute.xlu0 %1248 }
 0x9ac   : > { %v1253_v63 = vpack.c.bf16 %v1246_v60, %v1246_v60  ;;  %v1254_v4 = vpack.c.bf16 %v1249_v3, %v1249_v3 }
 0x9ae   : > { %2258 = vmatmul.mubr.msk.bf16.vlgmr.msra.gmra.mrb[32].mxu0 %vm527_vm3, %v1252_v62  ;;  %2264 = vmatmul.mubr.msk.bf16.vlgmr.msra.gmra.mrb[32].mxu1 %vm527_vm3, %v1253_v63 }
 0x9af   : > { %2268 = vmatpush3.bf16.xpose.msra.mxu0 %v1425_v1  ;;  %2274 = vmatpush3.bf16.msra.mxu1 %v1519_v2 }
 0x9b0   : > { %2269 = vmatprep.mubr.msk.bf16.mxu0 %vm2459_vm1, %v2458_v8  ;;  %2275 = vmatprep.mubr.msk.bf16.mxu1 %vm2459_vm1, %v2458_v8 }
 0x9b1   : > { %2285 = vmatprep.subr.bf16.mxu1 %v2458_v8  ;;  %2279 = vmatprep.subr.bf16.mxu0 %v2458_v8 }
 0x9b6   : > { %2270 = vmatmul.mubr.msk.bf16.vlgmr.msra.gmra.mrb[36].mxu0 %vm527_vm3, %v1254_v4 }
 0x9b7   : > { %2281 = vmatprep.mubr.msk.bf16.mxu0 %vm2459_vm1, %v2458_v8 }
 0xa0e   : > { %v1323_v5 = vpop.f32.mrb[28].mxu1 }
 0xa0f   : > { %v2253_v6 = vpop.f32.mrb[29].mxu1  ;;  %v1467_v7 = vsel %vm712_vm5, %v1323_v5, -inf }
 0xa10   : > { %1468 = vmax.xlane.f32.xlu1 %v1467_v7  ;;  %v1326_v0 = vpop.f32.mrb[30].mxu1 }
 0xa11   : > { %v2254_v9 = vpop.f32.mrb[31].mxu1 }
 0xa81   : > { %v1369_v61 = vpop.f32.mrb[32].mxu0  ;;  %v1415_v10 = vpop.f32.mrb[32].mxu1 }
 0xa82   : > { %v2259_v12 = vpop.f32.mrb[33].mxu0  ;;  %v2265_v13 = vpop.f32.mrb[33].mxu1  ;;  %v1470_v14 = vsel %vm712_vm5, %v1369_v61, -inf  ;;  %v1473_v23 = vsel %vm712_vm5, %v1415_v10, -inf }
 0xa83   : > { %v1418_v15 = vpop.f32.mrb[34].mxu1  ;;  %1471 = vmax.xlane.f32.xlu0 %v1470_v14  ;;  %v1372_v16 = vpop.f32.mrb[34].mxu0 }
 0xa84   : > { %v2260_v17 = vpop.f32.mrb[35].mxu0  ;;  %v2266_v22 = vpop.f32.mrb[35].mxu1 }
 0xa85   : > { %v2368_v22 = vld [vmem:[#allocation2 + $0x70] sm:$0xff]  }
 0xa87   : > { %1474 = vmax.xlane.f32.xlu0 %v1473_v23 }
 0xa89   : > { %v1461_v24 = vpop.f32.mrb[36].mxu0 }
 0xa8a   : > { %v2271_v25 = vpop.f32.mrb[37].mxu0  ;;  %v1476_v26 = vsel %vm712_vm5, %v1461_v24, -inf }
 0xa8b   : > { %1477 = vmax.xlane.f32.xlu1 %v1476_v26  ;;  %v1464_v27 = vpop.f32.mrb[38].mxu0 }
 0xa8c   : > { %v2272_v28 = vpop.f32.mrb[39].mxu0 }
 0xa9d   : > { %v1469_v30 = vpop.xlane.xlu1 %1468 }
 0xa9e   : > { %v1479_v31 = vsub.f32 %v1323_v5, %v1469_v30 }
 0xaa0   : > { %v1483_v32 = vmul.f32 1.442695, %v1479_v31 }
 0xaa2   : > { %2396 = vpow2.f32 %v1483_v32  ;;  %v2369_v32 = vld [vmem:[#allocation2 + $0x78] sm:$0xff]  }
 0xaac   : > { %v2397_v33 = vpop.eup %2396 }
 0xaad   : > { %v1491_v34 = vsel %vm712_vm5, %v2397_v33, 0.0 }
 0xaae   : > { %1492 = vadd.xlane.f32.xlu0 %v1491_v34 }
 0xb10   : > { %v1472_v35 = vpop.xlane.xlu0 %1471 }
 0xb11   : > { %v1480_v36 = vsub.f32 %v1369_v61, %v1472_v35 }
 0xb13   : > { %v1485_v37 = vmul.f32 1.442695, %v1480_v36 }
 0xb14   : > { %v1475_v38 = vpop.xlane.xlu0 %1474 }
 0xb15   : > { %2398 = vpow2.f32 %v1485_v37  ;;  %v1481_v39 = vsub.f32 %v1415_v10, %v1475_v38 }
 0xb17   : > { %v1487_v19 = vmul.f32 1.442695, %v1481_v39 }
 0xb18   : > { %v1478_v45 = vpop.xlane.xlu1 %1477 }
 0xb19   : > { %2400 = vpow2.f32 %v1487_v19  ;;  %v1482_v46 = vsub.f32 %v1461_v24, %v1478_v45 }
 0xb1b   : > { %v1489_v47 = vmul.f32 1.442695, %v1482_v46 }
 0xb1f   : > { %v2399_v40 = vpop.eup %2398 }
 0xb20   : > { %v1494_v21 = vsel %vm712_vm5, %v2399_v40, 0.0 }
 0xb21   : > { %1495 = vadd.xlane.f32.xlu1 %v1494_v21 }
 0xb23   : > { %v2401_v41 = vpop.eup %2400 }
 0xb24   : > { %v1497_v42 = vsel %vm712_vm5, %v2401_v41, 0.0 }
 0xb25   : > { %1498 = vadd.xlane.f32.xlu0 %v1497_v42  ;;  %v1723_v42 = vrot.slane %v2725_v20, %v365_v29  ;;  %v2370_v29 = vld [vmem:[%s2864_s2] sm:$0xff]  }
 0xb32   : > { %1273 = vrot.lane.b32.xlu1 %v2747_v51, %s2461_s24 }
 0xb3b   : > { %1270 = vrot.lane.b32.xlu0 %v2747_v51, %s2460_s23  ;;  %v1493_v44 = vpop.xlane.xlu0 %1492 }
 0xb3c   : > { %2402 = vrcp.f32 %v1493_v44 }
 0xb3d   : > { %2404 = vpow2.f32 %v1489_v47 }
 0xb46   : > { %v2403_v48 = vpop.eup %2402 }
 0xb47   : > { %v1507_v49 = vmul.f32 %v2403_v48, %v2397_v33  ;;  %v2405_v53 = vpop.eup %2404 }
 0xb48   : > { %v1500_v54 = vsel %vm712_vm5, %v2405_v53, 0.0 }
 0xb49   : > { %v1511_v50 = vpack.c.bf16 %v1507_v49, %v1507_v49 }
 0xb4b   : > { %2276 = vmatmul.mubr.msk.bf16.vlgmr.msra.gmra.mrb[36].mxu1 %vm761_vm6, %v1511_v50 }
 0xb4c   : > { %2287 = vmatprep.mubr.msk.bf16.mxu1 %vm2459_vm1, %v2458_v8 }
 0xb56   : > { %1501 = vadd.xlane.f32.xlu1 %v1500_v54 }
 0xb67   : > { %1276 = vrot.lane.b32.xlu1 %v2747_v51, %s2462_s25 }
 0xbae   : > { %v1496_v55 = vpop.xlane.xlu1 %1495 }
 0xbaf   : > { %2406 = vrcp.f32 %v1496_v55 }
 0xbb2   : > { %v1499_v56 = vpop.xlane.xlu0 %1498  ;;  %v1274_v57 = vpop.permute.xlu1 %1273 }
 0xbb3   : > { %2408 = vrcp.f32 %v1499_v56  ;;  %v1281_v43 = vpack.c.bf16 %v1274_v57, %v1274_v57 }
 0xbb5   : > { %v1611_v60 = vsel %vm765_vm4, %v1281_v43, 0  ;;  %v2372_v43 = vld [vmem:[%s2865_s3] sm:$0xff]  }
 0xbb6   : > { %v1271_v62 = vpop.permute.xlu0 %1270  ;;  %2286 = vmatpush3.bf16.msra.mxu1 %v1611_v60  ;;  %v2373_v60 = vld [vmem:[%s2865_s3 + $0x8] sm:$0xff]  }
 0xbb7   : > { %v1280_v63 = vpack.c.bf16 %v1271_v62, %v1271_v62  ;;  %2297 = vmatprep.subr.bf16.mxu1 %v2458_v8 }
 0xbb9   : > { %v2407_v1 = vpop.eup %2406  ;;  %v1565_v2 = vsel %vm765_vm4, %v1280_v63, 0 }
 0xbba   : > { %v1508_v3 = vmul.f32 %v2407_v1, %v2399_v40  ;;  %2280 = vmatpush3.bf16.msra.mxu0 %v1565_v2  ;;  %v1796_v2 = vrot.slane %v2725_v20, %v431_v59  ;;  %v2375_v59 = vld [vmem:[%s2865_s3 + $0x18] sm:$0xff]  }
 0xbbb   : > { %2291 = vmatprep.subr.bf16.mxu0 %v2458_v8 }
 0xbbc   : > { %v1512_v51 = vpack.c.bf16 %v1508_v3, %v1508_v3 }
 0xbbd   : > { %v2409_v4 = vpop.eup %2408 }
 0xbbe   : > { %v1509_v5 = vmul.f32 %v2409_v4, %v2401_v41  ;;  %2282 = vmatmul.mubr.msk.bf16.vlgmr.msra.gmra.mrb[40].mxu0 %vm761_vm6, %v1512_v51  ;;  %v1801_v51 = vrot.slane %v2725_v20, %v972_v52  ;;  %v2070_v52 = vld [vmem:[%s2867_s5] ss:$0 sm:$0xff] }
 0xbbf   : > { %2293 = vmatprep.mubr.msk.bf16.mxu0 %vm2459_vm1, %v2458_v8 }
 0xbc0   : > { %v1513_v6 = vpack.c.bf16 %v1509_v5, %v1509_v5 }
 0xbc2   : > { %2288 = vmatmul.mubr.msk.bf16.vlgmr.msra.gmra.mrb[40].mxu1 %vm761_vm6, %v1513_v6 }
 0xbc3   : > { %2301 = vmatprep.mubr.msk.bf16.mxu1 %vm2459_vm1, %v2458_v8  ;;  %2298 = vmatpush3.bf16.msra.mxu1 %v2368_v22 }
 0xbc4   : > { %2299 = vmatprep.subr.bf16.mxu1 %v2458_v8 }
 0xbc7   : > { %2300 = vmatpush3.bf16.msra.mxu1 %v2369_v32 }
 0xbc8   : > { %2313 = vmatprep.subr.bf16.mxu1 %v2458_v8 }
 0xbe3   : > { %v1502_v7 = vpop.xlane.xlu1 %1501 }
 0xbe4   : > { %2410 = vrcp.f32 %v1502_v7 }
 0xbe7   : > { %v1277_v0 = vpop.permute.xlu1 %1276 }
 0xbe8   : > { %v1282_v9 = vpack.c.bf16 %v1277_v0, %v1277_v0  ;;  %v2374_v0 = vld [vmem:[%s2865_s3 + $0x10] sm:$0xff]  }
 0xbea   : > { %v1657_v61 = vsel %vm765_vm4, %v1282_v9, 0 }
 0xbeb   : > { %2292 = vmatpush3.bf16.msra.mxu0 %v1657_v61 }
 0xbec   : > { %2305 = vmatprep.subr.bf16.mxu0 %v2458_v8 }
 0xbee   : > { %v2411_v10 = vpop.eup %2410 }
 0xbef   : > { %v1510_v12 = vmul.f32 %v2411_v10, %v2405_v53 }
 0xbf1   : > { %v1514_v13 = vpack.c.bf16 %v1510_v12, %v1510_v12 }
 0xbf3   : > { %2294 = vmatmul.mubr.msk.bf16.vlgmr.msra.gmra.mrb[44].mxu0 %vm761_vm6, %v1514_v13 }
 0xbf4   : > { %2309 = vmatprep.mubr.msk.bf16.mxu0 %vm2459_vm1, %v2458_v8  ;;  %2306 = vmatpush3.bf16.msra.mxu0 %v2370_v29 }
 0xbf5   : > { %2307 = vmatprep.subr.bf16.mxu0 %v2458_v8 }
 0xc1e   : > { %v1555_v14 = vpop.f32.mrb[36].mxu1 }
 0xc1f   : > { %v2277_v15 = vpop.f32.mrb[37].mxu1 }
 0xc20   : > { %v1558_v16 = vpop.f32.mrb[38].mxu1 }
 0xc21   : > { %v2278_v17 = vpop.f32.mrb[39].mxu1 }
 0xc91   : > { %v1601_v23 = vpop.f32.mrb[40].mxu0 }
 0xc92   : > { %1700 = vrot.lane.b32.xlu0 %v1601_v23, %s2464_s27  ;;  %v2283_v24 = vpop.f32.mrb[41].mxu0  ;;  %s261_s27 = scalar_lea.vmem %s2868_s6, %s2028_s15 }
 0xc93   : > { %v1604_v25 = vpop.f32.mrb[42].mxu0 }
 0xc94   : > { %v2284_v26 = vpop.f32.mrb[43].mxu0 }
 0xc95   : > { %v1647_v27 = vpop.f32.mrb[40].mxu1  ;;  %v2414_v26 = vld [vmem:[%s2556_s18] sm:$0xff] }
 0xc96   : > { %1704 = vrot.lane.b32.xlu1 %v1647_v27, %s2463_s26  ;;  %v2289_v28 = vpop.f32.mrb[41].mxu1 }
 0xc97   : > { %v1650_v30 = vpop.f32.mrb[42].mxu1 }
 0xc98   : > { %v2290_v31 = vpop.f32.mrb[43].mxu1 }
 0xcc6   : > { %v1693_v33 = vpop.f32.mrb[44].mxu0 }
 0xcc7   : > { %1708 = vrot.lane.b32.xlu0 %v1693_v33, %s2465_s28  ;;  %v2295_v34 = vpop.f32.mrb[45].mxu0 }
 0xcc8   : > { %v1696_v35 = vpop.f32.mrb[46].mxu0 }
 0xcc9   : > { %v2296_v36 = vpop.f32.mrb[47].mxu0 }
 0xd04   : > { %v1701_v37 = vpop.permute.xlu0 %1700 }
 0xd05   : > { %v1711_v39 = vsel %vm527_vm3, %v1555_v14, %v1701_v37 }
 0xd08   : > { %v1705_v38 = vpop.permute.xlu1 %1704 }
 0xd09   : > { %v1712_v19 = vsel %vm960_vm7, %v1711_v39, %v1705_v38 }
 0xd39   : > { %v1709_v40 = vpop.permute.xlu0 %1708 }
 0xd3a   : > { %v1713_v21 = vsel %vm962_vm8, %v1712_v19, %v1709_v40 }
 0xd3b   : > { %v1714_v41 = vpack.c.bf16 %v1713_v21, %v1713_v21 }
 0xd3d   : > { %2302 = vmatmul.mubr.msk.bf16.vlgmr.msra.gmra.mrb[44].mxu1 %vm312_vm2, %v1714_v41 }
 0xd3e   : > { %2321 = vmatprep.mubr.msk.bf16.mxu1 %vm2459_vm1, %v2458_v8  ;;  %2314 = vmatpush3.bf16.msra.mxu1 %v2372_v43 }
 0xd3f   : > { %2315 = vmatprep.subr.bf16.mxu1 %v2458_v8 }
 0xd42   : > { %2316 = vmatpush3.bf16.msra.mxu1 %v2373_v60 }
 0xd43   : > { %2317 = vmatprep.subr.bf16.mxu1 %v2458_v8 }
 0xd46   : > { %2318 = vmatpush3.bf16.msra.mxu1 %v2374_v0 }
 0xd47   : > { %2319 = vmatprep.subr.bf16.mxu1 %v2458_v8  ;;  %v1883_v8 = vrot.slane %v2725_v20, %v1045_v11 }
 0xd4a   : > { %2320 = vmatpush3.bf16.msra.mxu1 %v2375_v59 }
 0xe10   : > { %v1773_v44 = vpop.f32.mrb[44].mxu1 }
 0xe11   : > { %v1774_v45 = vadd.f32 %v1773_v44, %v1723_v42  ;;  %v2303_v46 = vpop.f32.mrb[45].mxu1 }
 0xe12   : > { %v1776_v47 = vpop.f32.mrb[46].mxu1 }
 0xe13   : > { %v1779_v48 = vadd.f32 %v1774_v45, %v2695_v58  ;;  %v2304_v49 = vpop.f32.mrb[47].mxu1  ;;  %v2371_v58 = vld [vmem:[%s2864_s2 + $0x8] sm:$0xff]  }
 0xe14   : > { %2308 = vmatpush3.bf16.msra.mxu0 %v2371_v58 }
 0xe15   : > { %v1780_v50 = vsel %vm266_vm0, %v1779_v48, 0.0 }
 0xe16   : > { %1781 = vadd.xlane.f32.xlu1 %v1780_v50 }
 0xea3   : > { %v1782_v53 = vpop.xlane.xlu1 %1781 }
 0xea4   : > { %v1783_v54 = vmul.f32 0.03125, %v1782_v53 }
 0xea6   : > { %v1784_v55 = vsub.f32 %v1779_v48, %v1783_v54 }
 0xea8   : > { %v1785_v56 = vmul.f32 %v1784_v55, %v1784_v55 }
 0xeaa   : > { %v1786_v57 = vsel %vm266_vm0, %v1785_v56, 0.0 }
 0xeab   : > { %1787 = vadd.xlane.f32.xlu0 %v1786_v57 }
 0xf38   : > { %v1788_v62 = vpop.xlane.xlu0 %1787 }
 0xf39   : > { %v1789_v63 = vmul.f32 0.03125, %v1788_v62 }
 0xf3b   : > { %v1790_v1 = vadd.f32 1e-05, %v1789_v63 }
 0xf3d   : > { %2412 = vrsqrt.f32 %v1790_v1 }
 0xf47   : > { %v2413_v3 = vpop.eup %2412 }
 0xf48   : > { %v1792_v4 = vmul.f32 %v2413_v3, %v1784_v55 }
 0xf4a   : > { %v1797_v5 = vmul.f32 %v1796_v2, %v1792_v4 }
 0xf4c   : > { %v1802_v6 = vadd.f32 %v1801_v51, %v1797_v5 }
 0xf4e   : > { %v1803_v7 = vpack.c.bf16 %v1802_v6, %v1802_v6 }
 0xf50   : > { %2310 = vmatmul.mubr.msk.bf16.vlgmr.msra.gmra.mrb[48].mxu0 %vm312_vm2, %v1803_v7 }
0x1023   : > { %v1864_v9 = vpop.f32.mrb[48].mxu0 }
0x1024   : > { %v1865_v61 = vadd.f32 %v2070_v52, %v1864_v9  ;;  %v2311_v10 = vpop.f32.mrb[49].mxu0 }
0x1025   : > { %v1867_v12 = vpop.f32.mrb[50].mxu0 }
0x1026   : > { %v1870_v13 = vmax.f32 %v1865_v61, 0.0  ;;  %v2312_v14 = vpop.f32.mrb[51].mxu0 }
0x1028   : > { %v1871_v15 = vpack.c.bf16 %v1870_v13, %v1870_v13 }
0x102a   : > { %2322 = vmatmul.mubr.msk.bf16.vlgmr.msra.gmra.mrb[48].mxu1 %vm1908_vm9, %v1871_v15 }
0x10fd   : > { %v1946_v16 = vpop.f32.mrb[48].mxu1 }
0x10fe   : > { %v1947_v17 = vadd.f32 %v1946_v16, %v1883_v8  ;;  %v2323_v22 = vpop.f32.mrb[49].mxu1 }
0x10ff   : > { %v1949_v23 = vpop.f32.mrb[50].mxu1 }
0x1100   : > { %v1952_v24 = vadd.f32 %v1947_v17, %v1779_v48  ;;  %v2324_v25 = vpop.f32.mrb[51].mxu1 }
0x1102   : > { %v1954_v27 = vsel %vm1953_vm10, %v1952_v24, %v2414_v26 }
0x1103   : > { %1955 = vst.msk [vmem:[%s261_s27] sm:$0xff] %vm312_vm2, %v1954_v27 }
0x1104 PF: > { %s17_s21 = sadd.s32 1, %s2453_s21  }
0x1105   : > { %p14_p3 = scmp.ge.s32.totalorder %s17_s21, 4  }
0x1107   :  { %16 = sbr.rel (!%p14_p3) target bundleno = 1 (0x1), region = 86 }
0x110e   :  { %1975 = vsyncpa [#allocation3], 1 }
0x110f   :  { %1977 = vsyncpa [#allocation3 + $0x1], 1 }

</bundles_post_ra>
